<compile_context>
chip_gen: v5e
topology: v5e:2x2
jax: 0.10.0
libtpu: 0.0.40
codegen_flags: <defaults>
</compile_context>

<pallas_src>
import functools

import jax
import jax.numpy as jnp
from jax.experimental import pallas as pl
from jax.experimental.pallas import tpu as pltpu


# Padded lane widths (input features / hidden / classes all padded to 128).
F_PAD = 128
H_PAD = 128
C_PAD = 128


# -----------------------------------------------------------------------------
# Pallas kernel: one grid step = `samples_per_step` independent forward passes,
# stacked along the sublane (M) axis via shared block-diagonal graph operators.
# -----------------------------------------------------------------------------
def gaitgraph_kernel(x_ref, g_ref, avg_ref, w_ref, b_ref, out_ref, *,
                     nodes_per_sample):
    sbn, _ = x_ref.shape                      # SB * N rows, F_PAD lanes

    x = x_ref[...]                            # (SBN, F_PAD) f32
    # torch.nan_to_num(nan=0, posinf=0, neginf=0)
    x = jnp.where(jnp.isfinite(x), x, 0.0)

    # Per-sample standardization: mean / unbiased std over each sample's nodes.
    # Done with a block-diagonal averaging matmul (AVG[r,c] = 1/N iff r,c in
    # the same sample) so everything stays in 2-D lane-dense tiles.
    avg = avg_ref[...]                        # (SBN, SBN) f32
    mean = jnp.dot(avg, x, preferred_element_type=jnp.float32)
    xc = x - mean
    var = jnp.dot(avg, xc * xc, preferred_element_type=jnp.float32)
    var = var * (nodes_per_sample / (nodes_per_sample - 1.0))   # torch.std ddof=1
    inv = pl.reciprocal(jnp.sqrt(var) + 1e-6, approx=True)      # EUP, not VPU divide
    xn = (xc * inv).astype(jnp.bfloat16)      # (SBN, F_PAD) bf16

    g = g_ref[...]                            # (SBN + SBG, SBN) bf16
    abd = g[0:sbn, :]                         # block-diag normalized adjacency
    pbd = g[sbn:, :]                          # block-diag global-mean-pool matrix

    w_all = w_ref[...]                        # (F_PAD, 3*H_PAD) bf16 [W1 | W2 | Wc]
    w1 = w_all[:, 0:H_PAD]
    w2 = w_all[:, H_PAD:2 * H_PAD]
    wc = w_all[:, 2 * H_PAD:3 * H_PAD]

    b_all = b_ref[...]                        # (8, H_PAD) f32; rows 0,1,2 = b1,b2,bc
    b1 = b_all[0:1, :]
    b2 = b_all[1:2, :]
    bc = b_all[2:3, :]

    # GCNConv 1: relu( A_hat @ (Xn @ W1) + b1 )
    h = jnp.dot(xn, w1, preferred_element_type=jnp.float32)
    h = jnp.dot(abd, h.astype(jnp.bfloat16),
                preferred_element_type=jnp.float32) + b1
    h = jnp.maximum(h, 0.0)

    # GCNConv 2: relu( A_hat @ (H @ W2) + b2 )
    h = jnp.dot(h.astype(jnp.bfloat16), w2, preferred_element_type=jnp.float32)
    h = jnp.dot(abd, h.astype(jnp.bfloat16),
                preferred_element_type=jnp.float32) + b2
    h = jnp.maximum(h, 0.0)

    # global_mean_pool + classifier
    pooled = jnp.dot(pbd, h.astype(jnp.bfloat16),
                     preferred_element_type=jnp.float32)
    out_ref[...] = jnp.dot(pooled.astype(jnp.bfloat16), wc,
                           preferred_element_type=jnp.float32) + bc


# -----------------------------------------------------------------------------
# One-time (init) preparation: graph operators + packed/padded parameters.
# -----------------------------------------------------------------------------
def build_ahat(edge_index, num_nodes):
    """Dense D^{-1/2}(A+I)D^{-1/2} (PyG gcn_norm; duplicate edges accumulate)."""
    src, dst = edge_index[0], edge_index[1]
    a = jnp.zeros((num_nodes, num_nodes), jnp.float32).at[dst, src].add(1.0)
    a = a + jnp.eye(num_nodes, dtype=jnp.float32)
    deg = jnp.sum(a, axis=1)
    dinv = jnp.where(deg > 0, 1.0 / jnp.sqrt(deg), 0.0)
    return dinv[:, None] * a * dinv[None, :]


def build_pool(batch, num_graphs, num_nodes):
    onehot = jax.nn.one_hot(batch, num_graphs, dtype=jnp.float32).T   # (G, N)
    counts = jnp.sum(onehot, axis=1, keepdims=True)
    return onehot / jnp.maximum(counts, 1.0)


def pad_to(a, shape):
    out = jnp.zeros(shape, jnp.float32)
    return out.at[tuple(slice(0, s) for s in a.shape)].set(a.astype(jnp.float32))


def prepare_graph(edge_index, batch, num_nodes, num_graphs, samples_per_step):
    """Shared-topology operators, block-diagonalized over samples_per_step."""
    ahat = build_ahat(edge_index, num_nodes)                # (N, N)
    pool = build_pool(batch, num_graphs, num_nodes)         # (G, N)
    eye = jnp.eye(samples_per_step, dtype=jnp.float32)
    abd = jnp.kron(eye, ahat)                               # (SB*N, SB*N)
    pbd = jnp.kron(eye, pool)                               # (SB*G, SB*N)
    graph_slab = jnp.concatenate([abd, pbd], axis=0).astype(jnp.bfloat16)
    avg = jnp.kron(eye, jnp.full((num_nodes, num_nodes),
                                 1.0 / num_nodes, jnp.float32))
    return graph_slab, avg


def prepare_params(params):
    """Pad + pack weights (bf16) and biases (f32) once, outside the call path."""
    w1 = pad_to(params["w1"], (F_PAD, H_PAD))
    w2 = pad_to(params["w2"], (H_PAD, H_PAD))
    wc = pad_to(params["wc"], (H_PAD, C_PAD))
    w_slab = jnp.concatenate([w1, w2, wc], axis=1).astype(jnp.bfloat16)
    b_slab = jnp.zeros((8, H_PAD), jnp.float32)
    b_slab = b_slab.at[0, :params["b1"].shape[0]].set(params["b1"].astype(jnp.float32))
    b_slab = b_slab.at[1, :params["b2"].shape[0]].set(params["b2"].astype(jnp.float32))
    b_slab = b_slab.at[2, :params["bc"].shape[0]].set(params["bc"].astype(jnp.float32))
    return w_slab, b_slab


# -----------------------------------------------------------------------------
# Per-call wrapper: pad node features, run the batched kernel, slice the output.
# -----------------------------------------------------------------------------
@functools.partial(jax.jit, static_argnames=("samples_per_step", "num_classes"))
def gaitgraph_forward(x, graph_slab, avg, w_slab, b_slab, *,
                      samples_per_step, num_classes):
    s, n, f_in = x.shape
    sb = samples_per_step
    assert s % sb == 0, "samples must be a multiple of samples_per_step"
    sbn = sb * n
    sbg = graph_slab.shape[0] - sbn
    g_per = sbg // sb
    steps = s // sb
    assert sbn % 8 == 0 and sbg % 8 == 0

    # Per-call glue: flatten nodes and zero-pad features to 128 lanes.
    x2 = jnp.pad(x.reshape(s * n, f_in).astype(jnp.float32),
                 ((0, 0), (0, F_PAD - f_in)))

    kernel = functools.partial(gaitgraph_kernel, nodes_per_sample=n)
    out = pl.pallas_call(
        kernel,
        out_shape=jax.ShapeDtypeStruct((steps * sbg, C_PAD), jnp.float32),
        grid_spec=pltpu.PrefetchScalarGridSpec(
            num_scalar_prefetch=0,
            grid=(steps,),
            in_specs=[
                pl.BlockSpec((sbn, F_PAD), lambda i: (i, 0)),        # x: streams
                pl.BlockSpec((sbn + sbg, sbn), lambda i: (0, 0)),    # A_hat+pool: resident
                pl.BlockSpec((sbn, sbn), lambda i: (0, 0)),          # avg: resident
                pl.BlockSpec((F_PAD, 3 * H_PAD), lambda i: (0, 0)),  # weights: resident
                pl.BlockSpec((8, H_PAD), lambda i: (0, 0)),          # biases: resident
            ],
            out_specs=pl.BlockSpec((sbg, C_PAD), lambda i: (i, 0)),
        ),
        compiler_params=pltpu.CompilerParams(
            # Independent samples per grid step -> shard across v7x's 2 TCs.
            dimension_semantics=("parallel",)),
    )(x2, graph_slab, avg, w_slab, b_slab)

    return out.reshape(s, g_per, C_PAD)[:, :, :num_classes]


# -----------------------------------------------------------------------------
# Pure-JAX f32 reference (one forward pass), vmapped over samples for checking.
# -----------------------------------------------------------------------------
def reference_forward_single(x, ahat, pool, params):
    x = jnp.where(jnp.isfinite(x), x, 0.0)
    mean = jnp.mean(x, axis=0, keepdims=True)
    xc = x - mean
    std = jnp.sqrt(jnp.sum(xc * xc, axis=0, keepdims=True) / (x.shape[0] - 1))
    xn = xc / (std + 1e-6)
    h = jnp.maximum(ahat @ (xn @ params["w1"]) + params["b1"], 0.0)
    h = jnp.maximum(ahat @ (h @ params["w2"]) + params["b2"], 0.0)
    return pool @ h @ params["wc"] + params["bc"]


if __name__ == "__main__":
    IN_DIM, HID, N_CLS = 2, 64, 3
    NODES_PER_GRAPH, GRAPHS_PER_SAMPLE = 8, 2
    N_NODES = NODES_PER_GRAPH * GRAPHS_PER_SAMPLE   # 16 nodes per forward pass
    N_SAMPLES = 16                                  # independent forward passes
    SB = 8                                          # samples per grid step (M = 128)

    key = jax.random.PRNGKey(0)
    kx, k1, k2, k3, k4, k5, k6 = jax.random.split(key, 7)

    # Node features for every sample; exercise the nan/inf -> 0 path.
    x = jax.random.normal(kx, (N_SAMPLES, N_NODES, IN_DIM), jnp.float32)
    x = x.at[0, 0, 0].set(jnp.nan).at[1, 3, 1].set(jnp.inf)

    # Shared skeleton topology: undirected chain within each graph of a sample.
    src, dst = [], []
    for g in range(GRAPHS_PER_SAMPLE):
        base = g * NODES_PER_GRAPH
        for i in range(NODES_PER_GRAPH - 1):
            src += [base + i, base + i + 1]
            dst += [base + i + 1, base + i]
    edge_index = jnp.array([src, dst], dtype=jnp.int32)
    batch = jnp.repeat(jnp.arange(GRAPHS_PER_SAMPLE, dtype=jnp.int32),
                       NODES_PER_GRAPH)

    # Deterministic synthetic parameters (GCNConv weight ~ Linear(in, out)).
    params = {
        "w1": 0.3 * jax.random.normal(k1, (IN_DIM, HID), jnp.float32),
        "b1": 0.1 * jax.random.normal(k2, (HID,), jnp.float32),
        "w2": 0.3 * jax.random.normal(k3, (HID, HID), jnp.float32),
        "b2": 0.1 * jax.random.normal(k4, (HID,), jnp.float32),
        "wc": 0.3 * jax.random.normal(k5, (HID, N_CLS), jnp.float32),
        "bc": 0.1 * jax.random.normal(k6, (N_CLS,), jnp.float32),
    }

    # One-time prep (hoisted out of the per-call jitted path).
    w_slab, b_slab = prepare_params(params)
    graph_slab, avg = prepare_graph(edge_index, batch, N_NODES,
                                    GRAPHS_PER_SAMPLE, SB)

    out = gaitgraph_forward(x, graph_slab, avg, w_slab, b_slab,
                            samples_per_step=SB, num_classes=N_CLS)
    out = jax.block_until_ready(out)            # (N_SAMPLES, GRAPHS, N_CLS)

    # Correctness check against the unpadded f32 reference.
    ahat = build_ahat(edge_index, N_NODES)
    pool = build_pool(batch, GRAPHS_PER_SAMPLE, N_NODES)
    ref = jax.vmap(lambda xi: reference_forward_single(xi, ahat, pool, params))(x)

    assert out.shape == (N_SAMPLES, GRAPHS_PER_SAMPLE, N_CLS)
    assert jnp.allclose(out, ref, atol=5e-2, rtol=5e-2), (
        float(jnp.max(jnp.abs(out - ref))))

    print("KERNEL_OK")
</pallas_src>

<mosaic_0001>
module attributes {stable_mosaic.version = 11 : i64} {
  func.func @gaitgraph_kernel(%arg0: i32, %arg1: memref<128x128xf32, #tpu.memory_space<vmem>>, %arg2: memref<144x128xbf16, #tpu.memory_space<vmem>>, %arg3: memref<128x128xf32, #tpu.memory_space<vmem>>, %arg4: memref<128x384xbf16, #tpu.memory_space<vmem>>, %arg5: memref<8x128xf32, #tpu.memory_space<vmem>>, %arg6: memref<16x128xf32, #tpu.memory_space<vmem>>) attributes {dimension_semantics = [#tpu.dimension_semantics<parallel>], iteration_bounds = array<i64: 2>, scalar_prefetch = 0 : i64, scratch_operands = 0 : i64, tpu.core_type = #tpu.core_type<tc>, window_params = [{transform_indices = @transform_0, window_bounds = array<i64: 128, 128>}, {pipeline_mode = #tpu.pipeline_mode<synchronous>, transform_indices = @transform_1, window_bounds = array<i64: 144, 128>}, {pipeline_mode = #tpu.pipeline_mode<synchronous>, transform_indices = @transform_2, window_bounds = array<i64: 128, 128>}, {pipeline_mode = #tpu.pipeline_mode<synchronous>, transform_indices = @transform_3, window_bounds = array<i64: 128, 384>}, {pipeline_mode = #tpu.pipeline_mode<synchronous>, transform_indices = @transform_4, window_bounds = array<i64: 8, 128>}, {transform_indices = @transform_5, window_bounds = array<i64: 16, 128>}]} {
    %c0 = arith.constant 0 : index
    %c0_0 = arith.constant 0 : index
    %0 = vector.load %arg1[%c0, %c0_0] : memref<128x128xf32, #tpu.memory_space<vmem>>, vector<128x128xf32>
    %1 = tpu.weird %0 : vector<128x128xf32> -> vector<128x128xi1>
    %cst = arith.constant dense<true> : vector<128x128xi1>
    %2 = arith.xori %1, %cst : vector<128x128xi1>
    %cst_1 = arith.constant 0.000000e+00 : f32
    %3 = vector.broadcast %cst_1 : f32 to vector<128x128xf32>
    %4 = arith.select %2, %0, %3 : vector<128x128xi1>, vector<128x128xf32>
    %c0_2 = arith.constant 0 : index
    %c0_3 = arith.constant 0 : index
    %5 = vector.load %arg3[%c0_2, %c0_3] : memref<128x128xf32, #tpu.memory_space<vmem>>, vector<128x128xf32>
    %cst_4 = arith.constant dense<0.000000e+00> : vector<128x128xf32>
    %6 = tpu.matmul %5, %4, %cst_4 {dimension_numbers = #tpu.dot_dimension_numbers<[1], [0], [0], [1], [0, 0, 1, 1], [], []>} : vector<128x128xf32>, vector<128x128xf32>, vector<128x128xf32> -> vector<128x128xf32>
    %7 = arith.subf %4, %6 : vector<128x128xf32>
    %8 = arith.mulf %7, %7 : vector<128x128xf32>
    %cst_5 = arith.constant dense<0.000000e+00> : vector<128x128xf32>
    %9 = tpu.matmul %5, %8, %cst_5 {dimension_numbers = #tpu.dot_dimension_numbers<[1], [0], [0], [1], [0, 0, 1, 1], [], []>} : vector<128x128xf32>, vector<128x128xf32>, vector<128x128xf32> -> vector<128x128xf32>
    %cst_6 = arith.constant 1.06666672 : f32
    %10 = vector.broadcast %cst_6 : f32 to vector<128x128xf32>
    %11 = arith.mulf %9, %10 : vector<128x128xf32>
    %12 = math.sqrt %11 : vector<128x128xf32>
    %cst_7 = arith.constant 9.99999997E-7 : f32
    %13 = vector.broadcast %cst_7 : f32 to vector<128x128xf32>
    %14 = arith.addf %12, %13 : vector<128x128xf32>
    %15 = tpu.reciprocal %14 {approx = true} : vector<128x128xf32> -> vector<128x128xf32>
    %16 = arith.mulf %7, %15 : vector<128x128xf32>
    %17 = arith.truncf %16 : vector<128x128xf32> to vector<128x128xbf16>
    %c0_8 = arith.constant 0 : index
    %c0_9 = arith.constant 0 : index
    %18 = vector.load %arg2[%c0_8, %c0_9] : memref<144x128xbf16, #tpu.memory_space<vmem>>, vector<144x128xbf16>
    %19 = vector.extract_strided_slice %18 {offsets = [0, 0], sizes = [128, 128], strides = [1, 1]} : vector<144x128xbf16> to vector<128x128xbf16>
    %20 = vector.extract_strided_slice %18 {offsets = [128, 0], sizes = [16, 128], strides = [1, 1]} : vector<144x128xbf16> to vector<16x128xbf16>
    %c0_10 = arith.constant 0 : index
    %c0_11 = arith.constant 0 : index
    %21 = vector.load %arg4[%c0_10, %c0_11] : memref<128x384xbf16, #tpu.memory_space<vmem>>, vector<128x384xbf16>
    %22 = vector.extract_strided_slice %21 {offsets = [0, 0], sizes = [128, 128], strides = [1, 1]} : vector<128x384xbf16> to vector<128x128xbf16>
    %23 = vector.extract_strided_slice %21 {offsets = [0, 128], sizes = [128, 128], strides = [1, 1]} : vector<128x384xbf16> to vector<128x128xbf16>
    %24 = vector.extract_strided_slice %21 {offsets = [0, 256], sizes = [128, 128], strides = [1, 1]} : vector<128x384xbf16> to vector<128x128xbf16>
    %c0_12 = arith.constant 0 : index
    %c0_13 = arith.constant 0 : index
    %25 = vector.load %arg5[%c0_12, %c0_13] : memref<8x128xf32, #tpu.memory_space<vmem>>, vector<8x128xf32>
    %26 = vector.extract_strided_slice %25 {offsets = [0, 0], sizes = [1, 128], strides = [1, 1]} : vector<8x128xf32> to vector<1x128xf32>
    %27 = vector.extract_strided_slice %25 {offsets = [1, 0], sizes = [1, 128], strides = [1, 1]} : vector<8x128xf32> to vector<1x128xf32>
    %28 = vector.extract_strided_slice %25 {offsets = [2, 0], sizes = [1, 128], strides = [1, 1]} : vector<8x128xf32> to vector<1x128xf32>
    %cst_14 = arith.constant dense<0.000000e+00> : vector<128x128xf32>
    %29 = tpu.matmul %17, %22, %cst_14 {dimension_numbers = #tpu.dot_dimension_numbers<[1], [0], [0], [1], [0, 0, 1, 1], [], []>} : vector<128x128xbf16>, vector<128x128xbf16>, vector<128x128xf32> -> vector<128x128xf32>
    %30 = arith.truncf %29 : vector<128x128xf32> to vector<128x128xbf16>
    %cst_15 = arith.constant dense<0.000000e+00> : vector<128x128xf32>
    %31 = tpu.matmul %19, %30, %cst_15 {dimension_numbers = #tpu.dot_dimension_numbers<[1], [0], [0], [1], [0, 0, 1, 1], [], []>} : vector<128x128xbf16>, vector<128x128xbf16>, vector<128x128xf32> -> vector<128x128xf32>
    %32 = vector.broadcast %26 : vector<1x128xf32> to vector<128x128xf32>
    %33 = arith.addf %31, %32 : vector<128x128xf32>
    %cst_16 = arith.constant 0.000000e+00 : f32
    %34 = vector.broadcast %cst_16 : f32 to vector<128x128xf32>
    %35 = arith.maximumf %33, %34 : vector<128x128xf32>
    %36 = arith.truncf %35 : vector<128x128xf32> to vector<128x128xbf16>
    %cst_17 = arith.constant dense<0.000000e+00> : vector<128x128xf32>
    %37 = tpu.matmul %36, %23, %cst_17 {dimension_numbers = #tpu.dot_dimension_numbers<[1], [0], [0], [1], [0, 0, 1, 1], [], []>} : vector<128x128xbf16>, vector<128x128xbf16>, vector<128x128xf32> -> vector<128x128xf32>
    %38 = arith.truncf %37 : vector<128x128xf32> to vector<128x128xbf16>
    %cst_18 = arith.constant dense<0.000000e+00> : vector<128x128xf32>
    %39 = tpu.matmul %19, %38, %cst_18 {dimension_numbers = #tpu.dot_dimension_numbers<[1], [0], [0], [1], [0, 0, 1, 1], [], []>} : vector<128x128xbf16>, vector<128x128xbf16>, vector<128x128xf32> -> vector<128x128xf32>
    %40 = vector.broadcast %27 : vector<1x128xf32> to vector<128x128xf32>
    %41 = arith.addf %39, %40 : vector<128x128xf32>
    %cst_19 = arith.constant 0.000000e+00 : f32
    %42 = vector.broadcast %cst_19 : f32 to vector<128x128xf32>
    %43 = arith.maximumf %41, %42 : vector<128x128xf32>
    %44 = arith.truncf %43 : vector<128x128xf32> to vector<128x128xbf16>
    %cst_20 = arith.constant dense<0.000000e+00> : vector<16x128xf32>
    %45 = tpu.matmul %20, %44, %cst_20 {dimension_numbers = #tpu.dot_dimension_numbers<[1], [0], [0], [1], [0, 0, 1, 1], [], []>} : vector<16x128xbf16>, vector<128x128xbf16>, vector<16x128xf32> -> vector<16x128xf32>
    %46 = arith.truncf %45 : vector<16x128xf32> to vector<16x128xbf16>
    %cst_21 = arith.constant dense<0.000000e+00> : vector<16x128xf32>
    %47 = tpu.matmul %46, %24, %cst_21 {dimension_numbers = #tpu.dot_dimension_numbers<[1], [0], [0], [1], [0, 0, 1, 1], [], []>} : vector<16x128xbf16>, vector<128x128xbf16>, vector<16x128xf32> -> vector<16x128xf32>
    %48 = vector.broadcast %28 : vector<1x128xf32> to vector<16x128xf32>
    %49 = arith.addf %47, %48 : vector<16x128xf32>
    %c0_22 = arith.constant 0 : index
    %c0_23 = arith.constant 0 : index
    %50 = vector.load %arg6[%c0_22, %c0_23] : memref<16x128xf32, #tpu.memory_space<vmem>>, vector<16x128xf32>
    tpu.vector_store %arg6[%c0_22, %c0_23], %49 {strides = array<i32>} : memref<16x128xf32, #tpu.memory_space<vmem>>, vector<16x128xf32>,
    return
  }
  func.func @transform_0(%arg0: i32) -> (i32, i32) {
    %c0_i32 = arith.constant 0 : i32
    %c0_i32_0 = arith.constant 0 : i32
    return %arg0, %c0_i32 : i32, i32
  }
  func.func @transform_1(%arg0: i32) -> (i32, i32) {
    %c0_i32 = arith.constant 0 : i32
    %c0_i32_0 = arith.constant 0 : i32
    %c0_i32_1 = arith.constant 0 : i32
    return %c0_i32, %c0_i32_0 : i32, i32
  }
  func.func @transform_2(%arg0: i32) -> (i32, i32) {
    %c0_i32 = arith.constant 0 : i32
    %c0_i32_0 = arith.constant 0 : i32
    %c0_i32_1 = arith.constant 0 : i32
    return %c0_i32, %c0_i32_0 : i32, i32
  }
  func.func @transform_3(%arg0: i32) -> (i32, i32) {
    %c0_i32 = arith.constant 0 : i32
    %c0_i32_0 = arith.constant 0 : i32
    %c0_i32_1 = arith.constant 0 : i32
    return %c0_i32, %c0_i32_0 : i32, i32
  }
  func.func @transform_4(%arg0: i32) -> (i32, i32) {
    %c0_i32 = arith.constant 0 : i32
    %c0_i32_0 = arith.constant 0 : i32
    %c0_i32_1 = arith.constant 0 : i32
    return %c0_i32, %c0_i32_0 : i32, i32
  }
  func.func @transform_5(%arg0: i32) -> (i32, i32) {
    %c0_i32 = arith.constant 0 : i32
    %c0_i32_0 = arith.constant 0 : i32
    return %arg0, %c0_i32 : i32, i32
  }
}

</mosaic_0001>

<bundles_post_ra>
// kernel: gaitgraph_forward.1
= control target key start
LH: loop header
LB: loop body
LE: loop exit
PB: predicated region body
PF: predicated region fallthrough
CT: control target
= control target key end

     0   :  { %s1653_s18 = smov 0   ;;  %s2510_s0 = inlined_call_operand.vmem [shape: f32[256,128], index: 0, kind: input, shape index: {}]   ;;  %s2511_s1 = inlined_call_operand.vmem [shape: bf16[144,128], index: 1, kind: input, shape index: {}]   ;;  %s2512_s2 = inlined_call_operand.vmem [shape: f32[128,128], index: 2, kind: input, shape index: {}]   ;;  %s2513_s3 = inlined_call_operand.vmem [shape: bf16[128,384], index: 3, kind: input, shape index: {}]   ;;  %s2514_s4 = inlined_call_operand.vmem [shape: f32[8,128], index: 4, kind: input, shape index: {}]   ;;  %s2515_s5 = inlined_call_operand.vmem [shape: f32[32,128], index: 5, kind: output, shape index: {}]  }
   0x1 LB: > { %s1317_s19 = sadd.s32 4294967295, %s1620_s18   ;;  %p1321_p0 = scmp.ge.s32.totalorder %s1620_s18, 1  ;;  %s1620_s18 = sphi %s1653_s18, %s15_s18  }
   0x2   : > { %p188_p1 = scmp.lt.s32.totalorder %s1620_s18, 3 }
   0x4   : > { %p189_p2 = pnand %p1321_p0, %p188_p1 }
   0x6   : > { %192 = sbr.rel (%p189_p2) target bundleno = 1714 (0x6b2), region = 40 }
   0xb   : > { %s1322_s20 = sshll.u32 %s1317_s19, 4  ;;  %vm1622_vm3 = vmmov 1   ;;  %v2540_v19 = vmov 0  ;;  %v2542_v21 = vmov 0  ;;  %v2544_v23 = vmov 0  ;;  %v1902_v32 = vld [vmem:[%s2512_s2 + $0x48] sm:$0xff] }
   0xc   : > { %p217_p3 = scmp.lt.s32.totalorder %s1322_s20, 31  ;;  %v1910_v33 = vld [vmem:[%s2512_s2] sm:$0xff]  ;;  %v1923_v34 = vld [vmem:[%s2512_s2 + $0x50] sm:$0xff]  ;;  %v1928_v35 = vld [vmem:[%s2512_s2 + $0x8] sm:$0xff]  ;;  %s1324_s10 = sshll.u32 %s1317_s19, 1 }
   0xd   : > { %v1935_v36 = vld [vmem:[%s2512_s2 + $0x58] sm:$0xff]  ;;  %v1940_v37 = vld [vmem:[%s2512_s2 + $0x10] sm:$0xff]  ;;  %v1947_v38 = vld [vmem:[%s2512_s2 + $0x60] sm:$0xff]  ;;  %p223_p4 = scmp.lt.s32.totalorder %s1324_s10, 3 }
   0xe   : > { %s2571_s20 = smov (!%p217_p3, %s1322_s20), 31  ;;  %v1952_v39 = vld [vmem:[%s2512_s2 + $0x18] sm:$0xff]  ;;  %v1959_v40 = vld [vmem:[%s2512_s2 + $0x68] sm:$0xff]  ;;  %v1964_v41 = vld [vmem:[%s2512_s2 + $0x20] sm:$0xff] }
   0xf   : > { %s1323_s21 = sshll.u32 %s2571_s20, 3  ;;  %v1974_v43 = vld [vmem:[%s2512_s2 + $0x70] sm:$0xff]  ;;  %v1979_v44 = vld [vmem:[%s2512_s2 + $0x28] sm:$0xff]  ;;  %v1986_v45 = vld [vmem:[%s2512_s2 + $0x78] sm:$0xff]  ;;  %s2573_s10 = smov (!%p223_p4, %s1324_s10), 3 }
  0x10   : > { %s1666_s24 = scalar_lea.vmem %s2510_s0, %s1323_s21  ;;  %2556 = vst [vmem:[#allocation2_spill] sm:$0xff] %v1974_v43  ;;  %v1991_v46 = vld [vmem:[%s2512_s2 + $0x30] sm:$0xff]  ;;  %v1998_v47 = vld [vmem:[%s2512_s2 + $0x38] sm:$0xff]  ;;  %v2004_v48 = vld [vmem:[%s2512_s2 + $0x40] sm:$0xff]  ;;  %s1325_s11 = sshll.u32 %s2573_s10, 3 }
  0x11   : > { %v1669_v0 = vld [vmem:[%s1666_s24 + $0x78] sm:$0xff]  ;;  %v1672_v1 = vld [vmem:[%s1666_s24 + $0x70] sm:$0xff]  ;;  %v1675_v2 = vld [vmem:[%s1666_s24 + $0x68] sm:$0xff]  ;;  %2557 = vst [vmem:[#allocation3_spill] sm:$0xff] %v1986_v45  ;;  %s226_s14 = scalar_lea.vmem %s2515_s5, %s1325_s11 }
  0x12   : > { %vm259_vm0 = vweird.f32 %v1669_v0  ;;  %vm258_vm1 = vweird.f32 %v1672_v1  ;;  %vm257_vm2 = vweird.f32 %v1675_v2  ;;  %v1681_v3 = vld [vmem:[%s1666_s24 + $0x60] sm:$0xff]  ;;  %v1689_v5 = vld [vmem:[%s1666_s24 + $0x58] sm:$0xff]  ;;  %v1709_v8 = vld [vmem:[%s1666_s24 + $0x50] sm:$0xff]  ;;  %2558 = vst [vmem:[#allocation4_spill] sm:$0xff] %v1991_v46 }
  0x13   : > { %vm1684_vm4 = vmxor %vm259_vm0, %vm1622_vm3  ;;  %vm256_vm6 = vweird.f32 %v1681_v3  ;;  %vm255_vm8 = vweird.f32 %v1689_v5  ;;  %v1724_v10 = vld [vmem:[%s1666_s24 + $0x48] sm:$0xff]  ;;  %vm254_vm10 = vweird.f32 %v1709_v8  ;;  %v1739_v12 = vld [vmem:[%s1666_s24 + $0x40] sm:$0xff]  ;;  %2559 = vst [vmem:[#allocation5_spill] sm:$0xff] %v1998_v47 }
  0x14   : > { %1509 = vmatpush.msk.msra.mxu2 %vm1684_vm4, %v1669_v0  ;;  %vm1695_vm5 = vmxor %vm258_vm1, %vm1622_vm3  ;;  %1326 = vmatpush.msk.msra.mxu0 %vm1684_vm4, %v1669_v0  ;;  %vm253_vm12 = vweird.f32 %v1724_v10  ;;  %v1754_v14 = vld [vmem:[%s1666_s24 + $0x38] sm:$0xff]  ;;  %vm252_vm14 = vweird.f32 %v1739_v12  ;;  %v1769_v16 = vld [vmem:[%s1666_s24 + $0x30] sm:$0xff]  ;;  %2560 = vst [vmem:[#allocation6_spill] sm:$0xff] %v2004_v48  ;;  %v291_v63 = vsel %vm1684_vm4, %v1669_v0, 0.0 }
  0x15   : > { %vm1704_vm7 = vmxor %vm257_vm2, %vm1622_vm3  ;;  %vm251_vm0 = vweird.f32 %v1754_v14  ;;  %v1784_v18 = vld [vmem:[%s1666_s24 + $0x28] sm:$0xff]  ;;  %vm250_vm2 = vweird.f32 %v1769_v16  ;;  %v1799_v20 = vld [vmem:[%s1666_s24 + $0x20] sm:$0xff]  ;;  %v290_v62 = vsel %vm1695_vm5, %v1672_v1, 0.0 }
  0x16   : > { %1510 = vmatpush.msk.msra.mxu2 %vm1695_vm5, %v1672_v1  ;;  %1327 = vmatpush.msk.msra.mxu0 %vm1695_vm5, %v1672_v1  ;;  %vm1719_vm9 = vmxor %vm256_vm6, %vm1622_vm3  ;;  %v1814_v22 = vld [vmem:[%s1666_s24 + $0x18] sm:$0xff]  ;;  %v1829_v24 = vld [vmem:[%s1666_s24 + $0x10] sm:$0xff]  ;;  %v289_v42 = vsel %vm1704_vm7, %v1675_v2, 0.0 }
  0x17   : > { %vm1734_vm11 = vmxor %vm255_vm8, %vm1622_vm3  ;;  %vm249_vm8 = vweird.f32 %v1784_v18  ;;  %v1844_v26 = vld [vmem:[%s1666_s24 + $0x8] sm:$0xff]  ;;  %v1859_v28 = vld [vmem:[%s1666_s24] sm:$0xff] }
  0x18   : > { %1511 = vmatpush.msk.msra.mxu2 %vm1704_vm7, %v1675_v2  ;;  %1328 = vmatpush.msk.msra.mxu0 %vm1704_vm7, %v1675_v2  ;;  %vm1749_vm13 = vmxor %vm254_vm10, %vm1622_vm3  ;;  %v287_v0 = vsel %vm1734_vm11, %v1689_v5, 0.0 }
  0x19   : > { %vm1764_vm15 = vmxor %vm253_vm12, %vm1622_vm3  ;;  %vm248_vm12 = vweird.f32 %v1799_v20  ;;  %v2566_v31 = vld [vmem:[#allocation4_spill] sm:$0xff] }
  0x1a   : > { %1512 = vmatpush.msk.msra.mxu2 %vm1719_vm9, %v1681_v3  ;;  %1329 = vmatpush.msk.msra.mxu0 %vm1719_vm9, %v1681_v3  ;;  %vm1779_vm1 = vmxor %vm252_vm14, %vm1622_vm3 }
  0x1b   : > { %vm1794_vm6 = vmxor %vm251_vm0, %vm1622_vm3  ;;  %vm247_vm0 = vweird.f32 %v1814_v22  ;;  %v284_v11 = vsel %vm1779_vm1, %v1739_v12, 0.0 }
  0x1c   : > { %1513 = vmatpush.msk.msra.mxu2 %vm1734_vm11, %v1689_v5  ;;  %1330 = vmatpush.msk.msra.mxu0 %vm1734_vm11, %v1689_v5  ;;  %v2541_v19 = vsel %vm1794_vm6, 4294967295, %v2540_v19  ;;  %vm1809_vm10 = vmxor %vm250_vm2, %vm1622_vm3  ;;  %v285_v5 = vsel %vm1764_vm15, %v1724_v10, 0.0 }
  0x1d   : > { %v2543_v21 = vsel %vm1809_vm10, 4294967295, %v2542_v21  ;;  %vm1824_vm14 = vmxor %vm249_vm8, %vm1622_vm3  ;;  %vm246_vm8 = vweird.f32 %v1829_v24 }
  0x1e   : > { %1514 = vmatpush.msk.msra.mxu2 %vm1749_vm13, %v1709_v8  ;;  %1331 = vmatpush.msk.msra.mxu0 %vm1749_vm13, %v1709_v8  ;;  %v2545_v23 = vsel %vm1824_vm14, 4294967295, %v2544_v23  ;;  %vm1839_vm2 = vmxor %vm248_vm12, %vm1622_vm3  ;;  %vm245_vm12 = vweird.f32 %v1844_v26  ;;  %vm2562_vm4 = vnez %v2543_v21 }
  0x1f   : > { %vm2563_vm5 = vnez %v2545_v23 }
  0x20   : > { %1515 = vmatpush.msk.msra.mxu2 %vm1764_vm15, %v1724_v10  ;;  %1332 = vmatpush.msk.msra.mxu0 %vm1764_vm15, %v1724_v10 }
  0x22   : > { %1516 = vmatpush.msk.msra.mxu2 %vm1779_vm1, %v1739_v12  ;;  %1333 = vmatpush.msk.msra.mxu0 %vm1779_vm1, %v1739_v12 }
  0x24   : > { %1517 = vmatpush.msk.msra.mxu2 %vm1794_vm6, %v1754_v14  ;;  %1334 = vmatpush.msk.msra.mxu0 %vm1794_vm6, %v1754_v14  ;;  %vm1881_vm6 = vmxor %vm245_vm12, %vm1622_vm3 }
  0x26   : > { %1518 = vmatpush.msk.msra.mxu2 %vm1809_vm10, %v1769_v16  ;;  %1335 = vmatpush.msk.msra.mxu0 %vm1809_vm10, %v1769_v16  ;;  %vm1854_vm10 = vmxor %vm247_vm0, %vm1622_vm3  ;;  %vm244_vm0 = vweird.f32 %v1859_v28 }
  0x27   : > { %v279_v23 = vsel %vm1854_vm10, %v1814_v22, 0.0 }
  0x28   : > { %1519 = vmatpush.msk.msra.mxu2 %vm1824_vm14, %v1784_v18  ;;  %1336 = vmatpush.msk.msra.mxu0 %vm1824_vm14, %v1784_v18  ;;  %vm1869_vm14 = vmxor %vm246_vm8, %vm1622_vm3 }
  0x29   : > { %vm1892_vm8 = vmxor %vm244_vm0, %vm1622_vm3  ;;  %vm2561_vm3 = vnez %v2541_v19 }
  0x2a   : > { %1520 = vmatpush.msk.msra.mxu2 %vm1839_vm2, %v1799_v20  ;;  %1337 = vmatpush.msk.msra.mxu0 %vm1839_vm2, %v1799_v20  ;;  %v283_v12 = vsel %vm2561_vm3, %v1754_v14, 0.0  ;;  %v281_v14 = vsel %vm2563_vm5, %v1784_v18, 0.0 }
  0x2c   : > { %1521 = vmatpush.msk.msra.mxu2 %vm1854_vm10, %v1814_v22  ;;  %1338 = vmatpush.msk.msra.mxu0 %vm1854_vm10, %v1814_v22  ;;  %v277_v22 = vsel %vm1881_vm6, %v1844_v26, 0.0 }
  0x2e   : > { %1522 = vmatpush.msk.msra.mxu2 %vm1869_vm14, %v1829_v24  ;;  %1339 = vmatpush.msk.msra.mxu0 %vm1869_vm14, %v1829_v24 }
  0x30   : > { %1523 = vmatpush.msk.msra.mxu2 %vm1881_vm6, %v1844_v26  ;;  %1340 = vmatpush.msk.msra.mxu0 %vm1881_vm6, %v1844_v26  ;;  %v2564_v26 = vsel %vm1892_vm8, %v1859_v28, 0.0 }
  0x32   : > { %1524 = vmatpush.msk.msra.mxu2 %vm1892_vm8, %v1859_v28  ;;  %1341 = vmatpush.msk.msra.mxu0 %vm1892_vm8, %v1859_v28  ;;  %v2565_v28 = vld [vmem:[#allocation2_spill] sm:$0xff] }
  0x33   : > { %351 = vmatmul.f32.vlgmr.msra.gmra.mxu2 %v1902_v32  ;;  %324 = vmatmul.f32.vlgmr.msra.gmra.mxu0 %v1910_v33 }
  0x3b   : > { %354 = vmatmul.f32.gmra.mxu2 %v1923_v34  ;;  %327 = vmatmul.f32.gmra.mxu0 %v1928_v35 }
  0x43   : > { %357 = vmatmul.f32.gmra.mxu2 %v1935_v36  ;;  %330 = vmatmul.f32.gmra.mxu0 %v1940_v37 }
  0x4b   : > { %360 = vmatmul.f32.gmra.mxu2 %v1947_v38  ;;  %333 = vmatmul.f32.gmra.mxu0 %v1952_v39 }
  0x53   : > { %363 = vmatmul.f32.gmra.mxu2 %v1959_v40  ;;  %336 = vmatmul.f32.gmra.mxu0 %v1964_v41 }
  0x5b   : > { %366 = vmatmul.f32.gmra.mxu2 %v1974_v43  ;;  %339 = vmatmul.f32.gmra.mxu0 %v1979_v44 }
  0x63   : > { %369 = vmatmul.f32.gmra.mxu2 %v1986_v45  ;;  %342 = vmatmul.f32.gmra.mxu0 %v1991_v46  ;;  %v288_v46 = vsel %vm1719_vm9, %v1681_v3, 0.0  ;;  %v286_v3 = vsel %vm1749_vm13, %v1709_v8, 0.0 }
  0x6b   : > { %345 = vmatmul.f32.gmra.mxu0 %v1998_v47 }
  0x73   : > { %348 = vmatmul.f32.gmra.mxu0 %v2004_v48 }
  0xb0   : > { %v2007_v49 = vpop.f32.mrf.mxu0 }
  0xb1   : > { %v2124_v30 = vsub.f32 %v2564_v26, %v2007_v49 }
  0xb6   : > { %v352_v50 = vpop.f32.mrf.mxu2 }
  0xb8   : > { %v2009_v51 = vpop.f32.mrf.mxu0 }
  0xb9   : > { %v2115_v29 = vsub.f32 %v277_v22, %v2009_v51 }
  0xbb   : > { %v390_v51 = vmul.f32 %v2115_v29, %v2115_v29 }
  0xbe   : > { %v355_v52 = vpop.f32.mrf.mxu2 }
  0xc0   : > { %v2011_v53 = vpop.f32.mrf.mxu0 }
  0xc6   : > { %v358_v54 = vpop.f32.mrf.mxu2 }
  0xc7   : > { %v2045_v7 = vsub.f32 %v287_v0, %v358_v54  ;;  %v1352_v0 = vld [vmem:[%s2513_s3 + $0x30] sm:$0xf] }
  0xc8   : > { %v2013_v55 = vpop.f32.mrf.mxu0 }
  0xc9   : > { %v400_v15 = vmul.f32 %v2045_v7, %v2045_v7  ;;  %v2102_v25 = vsub.f32 %v279_v23, %v2013_v55 }
  0xcb   : > { %v392_v55 = vmul.f32 %v2102_v25, %v2102_v25 }
  0xce   : > { %v361_v56 = vpop.f32.mrf.mxu2 }
  0xcf   : > { %v2038_v2 = vsub.f32 %v288_v46, %v361_v56  ;;  %v2059_v46 = vsub.f32 %v285_v5, %v352_v50 }
  0xd0   : > { %v337_v57 = vpop.f32.mrf.mxu0 }
  0xd1   : > { %v401_v8 = vmul.f32 %v2038_v2, %v2038_v2 }
  0xd6   : > { %v364_v58 = vpop.f32.mrf.mxu2 }
  0xd7   : > { %v2031_v6 = vsub.f32 %v289_v42, %v364_v58  ;;  %v2055_v42 = vsub.f32 %v286_v3, %v355_v52  ;;  %v398_v52 = vmul.f32 %v2059_v46, %v2059_v46  ;;  %v389_v58 = vmul.f32 %v2124_v30, %v2124_v30 }
  0xd8   : > { %v340_v59 = vpop.f32.mrf.mxu0 }
  0xd9   : > { %v402_v9 = vmul.f32 %v2031_v6, %v2031_v6  ;;  %v399_v17 = vmul.f32 %v2055_v42, %v2055_v42  ;;  %v2087_v21 = vsub.f32 %v281_v14, %v340_v59  ;;  %v1360_v59 = vld [vmem:[%s2513_s3 + $0x60] sm:$0xf] }
  0xdb   : > { %v394_v27 = vmul.f32 %v2087_v21, %v2087_v21 }
  0xde   : > { %v367_v60 = vpop.f32.mrf.mxu2 }
  0xdf   : > { %v2024_v47 = vsub.f32 %v290_v62, %v367_v60  ;;  %v1498_v60 = vld [vmem:[%s2513_s3 + $0x68] sm:$0xf0]  ;;  %v1356_v62 = vld [vmem:[%s2513_s3 + $0x48] sm:$0xf] }
  0xe0   : > { %v343_v61 = vpop.f32.mrf.mxu0 }
  0xe1   : > { %v403_v4 = vmul.f32 %v2024_v47, %v2024_v47 }
  0xe6   : > { %v370_v48 = vpop.f32.mrf.mxu2 }
  0xe7   : > { %v2026_v45 = vsub.f32 %v291_v63, %v370_v48  ;;  %v282_v48 = vsel %vm2562_vm4, %v1769_v16, 0.0  ;;  %v280_v16 = vsel %vm1839_vm2, %v1799_v20, 0.0  ;;  %v278_v20 = vsel %vm1869_vm14, %v1829_v24, 0.0  ;;  %v1495_v63 = vld [vmem:[%s2513_s3 + $0x50] sm:$0xf0] }
  0xe8   : > { %v346_v43 = vpop.f32.mrf.mxu0  ;;  %v2082_v54 = vsub.f32 %v282_v48, %v343_v61  ;;  %v2094_v18 = vsub.f32 %v280_v16, %v337_v57  ;;  %v2110_v57 = vsub.f32 %v278_v20, %v2011_v53  ;;  %v1361_v61 = vor.u32 %v1498_v60, %v1360_v59 }
  0xe9   : > { %v404_v1 = vmul.f32 %v2026_v45, %v2026_v45  ;;  %v2073_v50 = vsub.f32 %v283_v12, %v346_v43  ;;  %v1486_v12 = vld [vmem:[%s2513_s3 + $0x8] sm:$0xf0] }
  0xea   : > { %v395_v56 = vmul.f32 %v2082_v54, %v2082_v54  ;;  %v393_v24 = vmul.f32 %v2094_v18, %v2094_v18  ;;  %v391_v53 = vmul.f32 %v2110_v57, %v2110_v57 }
  0xeb   : > { %405 = vmatpush.msra.mxu1 %v404_v1  ;;  %1525 = vmatpush.msra.mxu3 %v404_v1  ;;  %v396_v43 = vmul.f32 %v2073_v50, %v2073_v50  ;;  %v1357_v1 = vor.u32 %v1495_v63, %v1356_v62 }
  0xed   : > { %406 = vmatpush.msra.mxu1 %v403_v4  ;;  %1526 = vmatpush.msra.mxu3 %v403_v4  ;;  %v1492_v4 = vld [vmem:[%s2513_s3 + $0x38] sm:$0xf0] }
  0xef   : > { %407 = vmatpush.msra.mxu1 %v402_v9  ;;  %1527 = vmatpush.msra.mxu3 %v402_v9  ;;  %v1353_v9 = vor.u32 %v1492_v4, %v1352_v0 }
  0xf0   : > { %v349_v13 = vpop.f32.mrf.mxu0 }
  0xf1   : > { %408 = vmatpush.msra.mxu1 %v401_v8  ;;  %1528 = vmatpush.msra.mxu3 %v401_v8  ;;  %v2063_v10 = vsub.f32 %v284_v11, %v349_v13  ;;  %v1348_v11 = vld [vmem:[%s2513_s3 + $0x18] sm:$0xf]  ;;  %v1489_v8 = vld [vmem:[%s2513_s3 + $0x20] sm:$0xf0] }
  0xf2   : > { %v1349_v13 = vor.u32 %v1489_v8, %v1348_v11 }
  0xf3   : > { %409 = vmatpush.msra.mxu1 %v400_v15  ;;  %1529 = vmatpush.msra.mxu3 %v400_v15  ;;  %v397_v19 = vmul.f32 %v2063_v10, %v2063_v10  ;;  %v1344_v15 = vld [vmem:[%s2513_s3] sm:$0xf] }
  0xf4   : > { %v1345_v48 = vor.u32 %v1486_v12, %v1344_v15 }
  0xf5   : > { %410 = vmatpush.msra.mxu1 %v399_v17  ;;  %1530 = vmatpush.msra.mxu3 %v399_v17 }
  0xf7   : > { %411 = vmatpush.msra.mxu1 %v398_v52  ;;  %1531 = vmatpush.msra.mxu3 %v398_v52 }
  0xf9   : > { %412 = vmatpush.msra.mxu1 %v397_v19  ;;  %1532 = vmatpush.msra.mxu3 %v397_v19 }
  0xfb   : > { %413 = vmatpush.msra.mxu1 %v396_v43  ;;  %1533 = vmatpush.msra.mxu3 %v396_v43 }
  0xfd   : > { %414 = vmatpush.msra.mxu1 %v395_v56  ;;  %1534 = vmatpush.msra.mxu3 %v395_v56 }
  0xff   : > { %415 = vmatpush.msra.mxu1 %v394_v27  ;;  %1535 = vmatpush.msra.mxu3 %v394_v27 }
 0x101   : > { %416 = vmatpush.msra.mxu1 %v393_v24  ;;  %1536 = vmatpush.msra.mxu3 %v393_v24 }
 0x103   : > { %417 = vmatpush.msra.mxu1 %v392_v55  ;;  %1537 = vmatpush.msra.mxu3 %v392_v55 }
 0x105   : > { %418 = vmatpush.msra.mxu1 %v391_v53  ;;  %1538 = vmatpush.msra.mxu3 %v391_v53 }
 0x107   : > { %419 = vmatpush.msra.mxu1 %v390_v51  ;;  %1539 = vmatpush.msra.mxu3 %v390_v51 }
 0x109   : > { %420 = vmatpush.msra.mxu1 %v389_v58  ;;  %1540 = vmatpush.msra.mxu3 %v389_v58 }
 0x10a   : > { %421 = vmatmul.f32.vlgmr.msra.gmra.mxu1 %v1910_v33  ;;  %448 = vmatmul.f32.vlgmr.msra.gmra.mxu3 %v1902_v32  ;;  %v2567_v32 = vld [vmem:[#allocation3_spill] sm:$0xff]  ;;  %v2568_v33 = vld [vmem:[#allocation5_spill] sm:$0xff] }
 0x112   : > { %424 = vmatmul.f32.gmra.mxu1 %v1928_v35  ;;  %451 = vmatmul.f32.gmra.mxu3 %v1923_v34  ;;  %v2569_v34 = vld [vmem:[#allocation6_spill] sm:$0xff]  ;;  %v1372_v35 = vld [vmem:[%s2513_s3 + $0xa8] sm:$0xf] }
 0x11a   : > { %427 = vmatmul.f32.gmra.mxu1 %v1940_v37  ;;  %454 = vmatmul.f32.gmra.mxu3 %v1935_v36  ;;  %v1507_v36 = vld [vmem:[%s2513_s3 + $0xb0] sm:$0xf0] }
 0x11b   : > { %v1373_v37 = vor.u32 %v1507_v36, %v1372_v35 }
 0x11d   : > { %833 = vmatpush.bf16.msrb.mxu2 %v1373_v37 }
 0x122   : > { %430 = vmatmul.f32.gmra.mxu1 %v1952_v39  ;;  %457 = vmatmul.f32.gmra.mxu3 %v1947_v38  ;;  %v1368_v38 = vld [vmem:[%s2513_s3 + $0x90] sm:$0xf]  ;;  %v1504_v39 = vld [vmem:[%s2513_s3 + $0x98] sm:$0xf0] }
 0x12a   : > { %433 = vmatmul.f32.gmra.mxu1 %v1964_v41  ;;  %460 = vmatmul.f32.gmra.mxu3 %v1959_v40  ;;  %v1369_v40 = vor.u32 %v1504_v39, %v1368_v38  ;;  %v1364_v41 = vld [vmem:[%s2513_s3 + $0x78] sm:$0xf] }
 0x12c   : > { %834 = vmatpush.bf16.msrb.mxu2 %v1369_v40 }
 0x132   : > { %436 = vmatmul.f32.gmra.mxu1 %v1979_v44  ;;  %463 = vmatmul.f32.gmra.mxu3 %v2565_v28  ;;  %v1501_v44 = vld [vmem:[%s2513_s3 + $0x80] sm:$0xf0] }
 0x133   : > { %v1365_v49 = vor.u32 %v1501_v44, %v1364_v41 }
 0x135   : > { %835 = vmatpush.bf16.msrb.mxu2 %v1365_v49 }
 0x139   : > { %836 = vmatpush.bf16.msrb.mxu2 %v1361_v61 }
 0x13a   : > { %439 = vmatmul.f32.gmra.mxu1 %v2566_v31  ;;  %466 = vmatmul.f32.gmra.mxu3 %v2567_v32 }
 0x13d   : > { %837 = vmatpush.bf16.msrb.mxu2 %v1357_v1 }
 0x141   : > { %838 = vmatpush.bf16.msrb.mxu2 %v1353_v9 }
 0x142   : > { %442 = vmatmul.f32.gmra.mxu1 %v2568_v33 }
 0x145   : > { %839 = vmatpush.bf16.msrb.mxu2 %v1349_v13 }
 0x149   : > { %840 = vmatpush.bf16.msrb.mxu2 %v1345_v48 }
 0x14a   : > { %445 = vmatmul.f32.gmra.mxu1 %v2569_v34 }
 0x187   : > { %v422_v3 = vpop.f32.mrf.mxu1 }
 0x188   : > { %v470_v5 = vmul.f32 1.0666667, %v422_v3 }
 0x18a   : > { %1550 = vrsqrt.f32 %v470_v5  ;;  %vm493_vm7 = vcmp.eq.f32.partialorder %v470_v5, inf  ;;  %v496_v58 = vand.u32 2147483648, %v470_v5  ;;  %vm495_vm9 = vcmp.eq.f32.partialorder %v470_v5, 0.0 }
 0x18d   : > { %v449_v59 = vpop.f32.mrf.mxu3 }
 0x18f   : > { %v425_v17 = vpop.f32.mrf.mxu1 }
 0x190   : > { %v1551_v52 = vpop.eup %1550  ;;  %v471_v19 = vmul.f32 1.0666667, %v425_v17 }
 0x191   : > { %v487_v14 = vmul.f32 %v1551_v52, %v470_v5 }
 0x192   : > { %1552 = vrsqrt.f32 %v471_v19  ;;  %vm505_vm11 = vcmp.eq.f32.partialorder %v471_v19, inf  ;;  %v508_v40 = vand.u32 2147483648, %v471_v19  ;;  %vm507_vm13 = vcmp.eq.f32.partialorder %v471_v19, 0.0 }
 0x193   : > { %v488_v16 = vmul.f32 %v1551_v52, %v487_v14 }
 0x195   : > { %v489_v43 = vmul.f32 0.5, %v488_v16 }
 0x197   : > { %v428_v23 = vpop.f32.mrf.mxu1  ;;  %v490_v56 = vsub.f32 1.5, %v489_v43  ;;  %v2203_v43 = vpop.f32.mrf.mxu3 }
 0x198   : > { %v1553_v20 = vpop.eup %1552  ;;  %v472_v27 = vmul.f32 1.0666667, %v428_v23 }
 0x199   : > { %v499_v22 = vmul.f32 %v1553_v20, %v471_v19  ;;  %v491_v24 = vmul.f32 %v1551_v52, %v490_v56 }
 0x19a   : > { %1554 = vrsqrt.f32 %v472_v27  ;;  %vm517_vm15 = vcmp.eq.f32.partialorder %v472_v27, inf  ;;  %v520_v13 = vand.u32 2147483648, %v472_v27  ;;  %vm519_vm1 = vcmp.eq.f32.partialorder %v472_v27, 0.0 }
 0x19b   : > { %v492_v55 = vmul.f32 %v491_v24, %v470_v5  ;;  %v500_v26 = vmul.f32 %v1553_v20, %v499_v22 }
 0x19d   : > { %v494_v53 = vsel %vm493_vm7, %v470_v5, %v492_v55  ;;  %v501_v51 = vmul.f32 0.5, %v500_v26 }
 0x19e   : > { %v497_v34 = vsel %vm495_vm9, %v496_v58, %v494_v53 }
 0x19f   : > { %v431_v28 = vpop.f32.mrf.mxu1  ;;  %v502_v31 = vsub.f32 1.5, %v501_v51  ;;  %v678_v38 = vadd.f32 1e-06, %v497_v34 }
 0x1a0   : > { %v1555_v32 = vpop.eup %1554  ;;  %v473_v33 = vmul.f32 1.0666667, %v431_v28 }
 0x1a1   : > { %v503_v35 = vmul.f32 %v1553_v20, %v502_v31  ;;  %v511_v36 = vmul.f32 %v1555_v32, %v472_v27 }
 0x1a2   : > { %1556 = vrsqrt.f32 %v473_v33  ;;  %vm529_vm6 = vcmp.eq.f32.partialorder %v473_v33, inf  ;;  %v532_v55 = vand.u32 2147483648, %v473_v33  ;;  %vm531_vm10 = vcmp.eq.f32.partialorder %v473_v33, 0.0 }
 0x1a3   : > { %v504_v37 = vmul.f32 %v503_v35, %v471_v19  ;;  %v512_v39 = vmul.f32 %v1555_v32, %v511_v36  ;;  %1558 = vrcp.f32 %v678_v38 }
 0x1a5   : > { %v506_v41 = vsel %vm505_vm11, %v471_v19, %v504_v37  ;;  %v513_v44 = vmul.f32 0.5, %v512_v39 }
 0x1a6   : > { %v509_v49 = vsel %vm507_vm13, %v508_v40, %v506_v41 }
 0x1a7   : > { %v434_v60 = vpop.f32.mrf.mxu1  ;;  %v679_v61 = vadd.f32 1e-06, %v509_v49  ;;  %v514_v62 = vsub.f32 1.5, %v513_v44 }
 0x1a8   : > { %v1557_v63 = vpop.eup %1556  ;;  %v2196_v1 = vmul.f32 1.0666667, %v434_v60 }
 0x1a9   : > { %1560 = vrcp.f32 %v679_v61  ;;  %v515_v0 = vmul.f32 %v1555_v32, %v514_v62  ;;  %v523_v4 = vmul.f32 %v1557_v63, %v473_v33  ;;  %v1559_v5 = vpop.eup %1558 }
 0x1aa   : > { %1562 = vrsqrt.f32 %v2196_v1  ;;  %v710_v19 = vmul.f32 %v1559_v5, %v2124_v30  ;;  %vm541_vm14 = vcmp.eq.f32.partialorder %v2196_v1, inf  ;;  %v544_v41 = vand.u32 2147483648, %v2196_v1 }
 0x1ab   : > { %v516_v3 = vmul.f32 %v515_v0, %v472_v27  ;;  %v524_v9 = vmul.f32 %v1557_v63, %v523_v4  ;;  %vm543_vm2 = vcmp.eq.f32.partialorder %v2196_v1, 0.0 }
 0x1ad   : > { %v518_v11 = vsel %vm517_vm15, %v472_v27, %v516_v3  ;;  %v525_v8 = vmul.f32 0.5, %v524_v9 }
 0x1ae   : > { %v521_v16 = vsel %vm519_vm1, %v520_v13, %v518_v11 }
 0x1af   : > { %v1561_v15 = vpop.eup %1560  ;;  %v437_v12 = vpop.f32.mrf.mxu1  ;;  %v526_v17 = vsub.f32 1.5, %v525_v8  ;;  %v680_v24 = vadd.f32 1e-06, %v521_v16 }
 0x1b0   : > { %v1563_v48 = vpop.eup %1562  ;;  %v2199_v52 = vmul.f32 1.0666667, %v437_v12  ;;  %v711_v14 = vmul.f32 %v1561_v15, %v2115_v29  ;;  %v2207_v29 = vmul.f32 1.0666667, %v449_v59 }
 0x1b1   : > { %v527_v23 = vmul.f32 %v1557_v63, %v526_v17  ;;  %v535_v56 = vmul.f32 %v1563_v48, %v2196_v1 }
 0x1b2   : > { %1564 = vrsqrt.f32 %v2199_v52  ;;  %v726_v20 = vpack.c.bf16 %v711_v14, %v710_v19  ;;  %vm553_vm12 = vcmp.eq.f32.partialorder %v2199_v52, inf  ;;  %vm555_vm0 = vcmp.eq.f32.partialorder %v2199_v52, 0.0 }
 0x1b3   : > { %v528_v22 = vmul.f32 %v527_v23, %v473_v33  ;;  %v536_v27 = vmul.f32 %v1563_v48, %v535_v56  ;;  %1566 = vrcp.f32 %v680_v24  ;;  %v2234_v56 = vmul.f32 1.0666667, %v2203_v43 }
 0x1b4   : > { %841 = vmatmul.bf16.vlgmr.msrb.gmra.mxu2 %v726_v20  ;;  %vm601_vm7 = vcmp.eq.f32.partialorder %v2207_v29, inf  ;;  %vm603_vm9 = vcmp.eq.f32.partialorder %v2207_v29, 0.0 }
 0x1b5   : > { %v530_v26 = vsel %vm529_vm6, %v473_v33, %v528_v22  ;;  %v537_v30 = vmul.f32 0.5, %v536_v27  ;;  %v455_v33 = vpop.f32.mrf.mxu3  ;;  %vm613_vm1 = vcmp.eq.f32.partialorder %v2234_v56, inf }
 0x1b6   : > { %v533_v53 = vsel %vm531_vm10, %v532_v55, %v530_v26  ;;  %v2226_v13 = vmul.f32 1.0666667, %v455_v33  ;;  %vm615_vm10 = vcmp.eq.f32.partialorder %v2234_v56, 0.0 }
 0x1b7   : > { %v440_v51 = vpop.f32.mrf.mxu1  ;;  %v681_v58 = vadd.f32 1e-06, %v533_v53  ;;  %v538_v28 = vsub.f32 1.5, %v537_v30 }
 0x1b8   : > { %v1565_v31 = vpop.eup %1564  ;;  %v2209_v32 = vmul.f32 1.0666667, %v440_v51  ;;  %vm625_vm15 = vcmp.eq.f32.partialorder %v2226_v13, inf  ;;  %vm627_vm6 = vcmp.eq.f32.partialorder %v2226_v13, 0.0 }
 0x1b9   : > { %1568 = vrcp.f32 %v681_v58  ;;  %v539_v34 = vmul.f32 %v1563_v48, %v538_v28  ;;  %v547_v35 = vmul.f32 %v1565_v31, %v2199_v52  ;;  %v1567_v38 = vpop.eup %1566 }
 0x1ba   : > { %1570 = vrsqrt.f32 %v2209_v32  ;;  %v712_v62 = vmul.f32 %v1567_v38, %v2110_v57  ;;  %v556_v57 = vand.u32 2147483648, %v2199_v52  ;;  %vm565_vm8 = vcmp.eq.f32.partialorder %v2209_v32, inf }
 0x1bb   : > { %1572 = vrsqrt.f32 %v2207_v29  ;;  %v540_v36 = vmul.f32 %v539_v34, %v2196_v1  ;;  %v548_v37 = vmul.f32 %v1565_v31, %v547_v35  ;;  %v568_v58 = vand.u32 2147483648, %v2209_v32 }
 0x1bc   : > { %vm567_vm3 = vcmp.eq.f32.partialorder %v2209_v32, 0.0 }
 0x1bd   : > { %v542_v39 = vsel %vm541_vm14, %v2196_v1, %v540_v36  ;;  %v549_v40 = vmul.f32 0.5, %v548_v37  ;;  %v458_v15 = vpop.f32.mrf.mxu3 }
 0x1be   : > { %v545_v0 = vsel %vm543_vm2, %v544_v41, %v542_v39 }
 0x1bf   : > { %v1569_v44 = vpop.eup %1568  ;;  %v443_v49 = vpop.f32.mrf.mxu1  ;;  %v550_v59 = vsub.f32 1.5, %v549_v40  ;;  %v682_v8 = vadd.f32 1e-06, %v545_v0 }
 0x1c0   : > { %v1571_v60 = vpop.eup %1570  ;;  %v2219_v61 = vmul.f32 1.0666667, %v443_v49  ;;  %v713_v63 = vmul.f32 %v1569_v44, %v2102_v25 }
 0x1c1   : > { %v1573_v4 = vpop.eup %1572  ;;  %v551_v3 = vmul.f32 %v1565_v31, %v550_v59  ;;  %v559_v9 = vmul.f32 %v1571_v60, %v2209_v32 }
 0x1c2   : > { %1574 = vrsqrt.f32 %v2219_v61  ;;  %v727_v5 = vpack.c.bf16 %v713_v63, %v712_v62  ;;  %v595_v25 = vmul.f32 %v1573_v4, %v2207_v29  ;;  %vm577_vm4 = vcmp.eq.f32.partialorder %v2219_v61, inf }
 0x1c3   : > { %v552_v11 = vmul.f32 %v551_v3, %v2199_v52  ;;  %v560_v1 = vmul.f32 %v1571_v60, %v559_v9  ;;  %1576 = vrcp.f32 %v682_v8  ;;  %vm579_vm5 = vcmp.eq.f32.partialorder %v2219_v61, 0.0 }
 0x1c4   : > { %846 = vmatmul.bf16.gmra.mxu2 %v727_v5  ;;  %1578 = vrsqrt.f32 %v2226_v13  ;;  %v596_v22 = vmul.f32 %v1573_v4, %v595_v25 }
 0x1c5   : > { %v554_v12 = vsel %vm553_vm12, %v2199_v52, %v552_v11  ;;  %v561_v17 = vmul.f32 0.5, %v560_v1  ;;  %v461_v31 = vpop.f32.mrf.mxu3  ;;  %v2263_v1 = vmul.f32 1.0666667, %v458_v15 }
 0x1c6   : > { %v557_v48 = vsel %vm555_vm0, %v556_v57, %v554_v12  ;;  %v597_v43 = vmul.f32 0.5, %v596_v22  ;;  %v2260_v3 = vmul.f32 1.0666667, %v461_v31 }
 0x1c7   : > { %v446_v19 = vpop.f32.mrf.mxu1  ;;  %v683_v14 = vadd.f32 1e-06, %v557_v48  ;;  %v562_v16 = vsub.f32 1.5, %v561_v17  ;;  %v604_v48 = vand.u32 2147483648, %v2207_v29  ;;  %vm637_vm2 = vcmp.eq.f32.partialorder %v2263_v1, inf }
 0x1c8   : > { %v1575_v23 = vpop.eup %1574  ;;  %v2237_v20 = vmul.f32 1.0666667, %v446_v19  ;;  %v598_v38 = vsub.f32 1.5, %v597_v43  ;;  %vm649_vm14 = vcmp.eq.f32.partialorder %v2260_v3, inf  ;;  %vm651_vm12 = vcmp.eq.f32.partialorder %v2260_v3, 0.0 }
 0x1c9   : > { %1580 = vrcp.f32 %v683_v14  ;;  %v563_v24 = vmul.f32 %v1571_v60, %v562_v16  ;;  %v571_v27 = vmul.f32 %v1575_v23, %v2219_v61  ;;  %v1577_v26 = vpop.eup %1576  ;;  %vm639_vm0 = vcmp.eq.f32.partialorder %v2263_v1, 0.0 }
 0x1ca   : > { %1582 = vrsqrt.f32 %v2237_v20  ;;  %v2245_v51 = vpop.eup %1578  ;;  %v714_v33 = vmul.f32 %v1577_v26, %v2094_v18  ;;  %v580_v18 = vand.u32 2147483648, %v2219_v61  ;;  %vm589_vm11 = vcmp.eq.f32.partialorder %v2237_v20, inf }
 0x1cb   : > { %v564_v52 = vmul.f32 %v563_v24, %v2209_v32  ;;  %v572_v55 = vmul.f32 %v1575_v23, %v571_v27  ;;  %1584 = vrsqrt.f32 %v2234_v56  ;;  %v592_v15 = vand.u32 2147483648, %v2237_v20 }
 0x1cc   : > { %vm591_vm13 = vcmp.eq.f32.partialorder %v2237_v20, 0.0 }
 0x1cd   : > { %v566_v30 = vsel %vm565_vm8, %v2209_v32, %v564_v52  ;;  %v573_v53 = vmul.f32 0.5, %v572_v55  ;;  %v619_v32 = vmul.f32 %v2245_v51, %v2226_v13  ;;  %v464_v57 = vpop.f32.mrf.mxu3 }
 0x1ce   : > { %v569_v37 = vsel %vm567_vm3, %v568_v58, %v566_v30 }
 0x1cf   : > { %v1581_v28 = vpop.eup %1580  ;;  %v574_v34 = vsub.f32 1.5, %v573_v53  ;;  %v684_v59 = vadd.f32 1e-06, %v569_v37  ;;  %v620_v8 = vmul.f32 %v2245_v51, %v619_v32  ;;  %v2287_v37 = vmul.f32 1.0666667, %v464_v57 }
 0x1d0   : > { %v1583_v35 = vpop.eup %1582  ;;  %v715_v36 = vmul.f32 %v1581_v28, %v2087_v21  ;;  %v599_v21 = vmul.f32 %v1573_v4, %v598_v38 }
 0x1d1   : > { %v575_v39 = vmul.f32 %v1575_v23, %v574_v34  ;;  %v583_v40 = vmul.f32 %v1583_v35, %v2237_v20  ;;  %v1585_v41 = vpop.eup %1584  ;;  %1586 = vrcp.f32 %v684_v59  ;;  %v621_v17 = vmul.f32 0.5, %v620_v8 }
 0x1d2   : > { %v728_v44 = vpack.c.bf16 %v715_v36, %v714_v33  ;;  %v607_v0 = vmul.f32 %v1585_v41, %v2234_v56  ;;  %v600_v25 = vmul.f32 %v599_v21, %v2207_v29  ;;  %vm661_vm3 = vcmp.eq.f32.partialorder %v2287_v37, inf }
 0x1d3   : > { %v576_v49 = vmul.f32 %v575_v39, %v2219_v61  ;;  %v584_v60 = vmul.f32 %v1583_v35, %v583_v40  ;;  %v622_v27 = vsub.f32 1.5, %v621_v17  ;;  %v628_v39 = vand.u32 2147483648, %v2226_v13 }
 0x1d4   : > { %851 = vmatmul.bf16.gmra.mxu2 %v728_v44  ;;  %v608_v12 = vmul.f32 %v1585_v41, %v607_v0  ;;  %v602_v16 = vsel %vm601_vm7, %v2207_v29, %v600_v25 }
 0x1d5   : > { %v578_v62 = vsel %vm577_vm4, %v2219_v61, %v576_v49  ;;  %v585_v63 = vmul.f32 0.5, %v584_v60  ;;  %v605_v26 = vsel %vm603_vm9, %v604_v48, %v602_v16  ;;  %v467_v31 = vpop.f32.mrf.mxu3  ;;  %v623_v34 = vmul.f32 %v2245_v51, %v622_v27 }
 0x1d6   : > { %v581_v9 = vsel %vm579_vm5, %v580_v18, %v578_v62  ;;  %v609_v23 = vmul.f32 0.5, %v608_v12  ;;  %v2284_v36 = vmul.f32 1.0666667, %v467_v31  ;;  %v616_v49 = vand.u32 2147483648, %v2234_v56 }
 0x1d7   : > { %v685_v5 = vadd.f32 1e-06, %v581_v9  ;;  %v586_v11 = vsub.f32 1.5, %v585_v63  ;;  %v1587_v19 = vpop.eup %1586  ;;  %v640_v16 = vand.u32 2147483648, %v2263_v1  ;;  %vm663_vm5 = vcmp.eq.f32.partialorder %v2287_v37, 0.0 }
 0x1d8   : > { %v716_v55 = vmul.f32 %v1587_v19, %v2082_v54  ;;  %v610_v53 = vsub.f32 1.5, %v609_v23  ;;  %vm673_vm8 = vcmp.eq.f32.partialorder %v2284_v36, inf  ;;  %vm675_vm4 = vcmp.eq.f32.partialorder %v2284_v36, 0.0 }
 0x1d9   : > { %1588 = vrcp.f32 %v685_v5  ;;  %v587_v4 = vmul.f32 %v1583_v35, %v586_v11 }
 0x1da   : > { %1590 = vrsqrt.f32 %v2260_v3  ;;  %v611_v33 = vmul.f32 %v1585_v41, %v610_v53 }
 0x1db   : > { %v588_v61 = vmul.f32 %v587_v4, %v2237_v20  ;;  %1592 = vrsqrt.f32 %v2263_v1 }
 0x1dc   : > { %v612_v38 = vmul.f32 %v611_v33, %v2234_v56 }
 0x1dd   : > { %v590_v14 = vsel %vm589_vm11, %v2237_v20, %v588_v61  ;;  %v687_v20 = vadd.f32 1e-06, %v605_v26 }
 0x1de   : > { %v593_v22 = vsel %vm591_vm13, %v592_v15, %v590_v14  ;;  %v614_v60 = vsel %vm613_vm1, %v2234_v56, %v612_v38  ;;  %v652_v15 = vand.u32 2147483648, %v2260_v3 }
 0x1df   : > { %v1589_v24 = vpop.eup %1588  ;;  %v686_v30 = vadd.f32 1e-06, %v593_v22  ;;  %v617_v9 = vsel %vm615_vm10, %v616_v49, %v614_v60 }
 0x1e0   : > { %v1591_v52 = vpop.eup %1590  ;;  %v717_v43 = vmul.f32 %v1589_v24, %v2073_v50  ;;  %v624_v50 = vmul.f32 %v623_v34, %v2226_v13  ;;  %v688_v57 = vadd.f32 1e-06, %v617_v9 }
 0x1e1   : > { %v1593_v58 = vpop.eup %1592  ;;  %v643_v35 = vmul.f32 %v1591_v52, %v2260_v3  ;;  %1594 = vrcp.f32 %v686_v30 }
 0x1e2   : > { %v729_v28 = vpack.c.bf16 %v717_v43, %v716_v55  ;;  %v631_v54 = vmul.f32 %v1593_v58, %v2263_v1  ;;  %1596 = vrcp.f32 %v687_v20  ;;  %v626_v41 = vsel %vm625_vm15, %v2226_v13, %v624_v50 }
 0x1e3   : > { %v644_v29 = vmul.f32 %v1591_v52, %v643_v35  ;;  %1598 = vrsqrt.f32 %v2284_v36  ;;  %v629_v21 = vsel %vm627_vm6, %v628_v39, %v626_v41  ;;  %v664_v35 = vand.u32 2147483648, %v2287_v37 }
 0x1e4   : > { %856 = vmatmul.bf16.gmra.mxu2 %v729_v28  ;;  %v632_v51 = vmul.f32 %v1593_v58, %v631_v54  ;;  %1600 = vrsqrt.f32 %v2287_v37  ;;  %v689_v13 = vadd.f32 1e-06, %v629_v21 }
 0x1e5   : > { %v645_v44 = vmul.f32 0.5, %v644_v29 }
 0x1e6   : > { %v633_v32 = vmul.f32 0.5, %v632_v51  ;;  %1602 = vrcp.f32 %v689_v13 }
 0x1e7   : > { %v1595_v40 = vpop.eup %1594  ;;  %v646_v62 = vsub.f32 1.5, %v645_v44  ;;  %1604 = vrcp.f32 %v688_v57 }
 0x1e8   : > { %v1597_v59 = vpop.eup %1596  ;;  %v718_v18 = vmul.f32 %v1595_v40, %v2063_v10  ;;  %v634_v5 = vsub.f32 1.5, %v633_v32 }
 0x1e9   : > { %v1599_v63 = vpop.eup %1598  ;;  %v719_v0 = vmul.f32 %v1597_v59, %v2059_v46  ;;  %v647_v4 = vmul.f32 %v1591_v52, %v646_v62 }
 0x1ea   : > { %v1601_v11 = vpop.eup %1600  ;;  %v667_v25 = vmul.f32 %v1599_v63, %v2284_v36  ;;  %v635_v56 = vmul.f32 %v1593_v58, %v634_v5 }
 0x1eb   : > { %v730_v8 = vpack.c.bf16 %v719_v0, %v718_v18  ;;  %v655_v12 = vmul.f32 %v1601_v11, %v2287_v37  ;;  %v648_v10 = vmul.f32 %v647_v4, %v2260_v3 }
 0x1ec   : > { %v668_v61 = vmul.f32 %v1599_v63, %v667_v25  ;;  %v636_v46 = vmul.f32 %v635_v56, %v2263_v1  ;;  %v1603_v48 = vpop.eup %1602 }
 0x1ed   : > { %v656_v17 = vmul.f32 %v1601_v11, %v655_v12  ;;  %v650_v19 = vsel %vm649_vm14, %v2260_v3, %v648_v10  ;;  %v1605_v23 = vpop.eup %1604  ;;  %v721_v27 = vmul.f32 %v1603_v48, %v2045_v7  ;;  %v2345_v48 = vld [vmem:[%s2511_s1 + $0x10] sm:$0xff] }
 0x1ee   : > { %v669_v14 = vmul.f32 0.5, %v668_v61  ;;  %v638_v22 = vsel %vm637_vm2, %v2263_v1, %v636_v46  ;;  %v653_v52 = vsel %vm651_vm12, %v652_v15, %v650_v19  ;;  %v720_v43 = vmul.f32 %v1605_v23, %v2055_v42  ;;  %v2339_v15 = vld [vmem:[%s2511_s1 + $0x8] sm:$0xff]  ;;  %v2351_v19 = vld [vmem:[%s2511_s1 + $0x18] sm:$0xff] }
 0x1ef   : > { %v657_v24 = vmul.f32 0.5, %v656_v17  ;;  %v641_v26 = vsel %vm639_vm0, %v640_v16, %v638_v22  ;;  %v691_v30 = vadd.f32 1e-06, %v653_v52  ;;  %v676_v42 = vand.u32 2147483648, %v2284_v36  ;;  %v2333_v17 = vld [vmem:[%s2511_s1] sm:$0xff]  ;;  %v2363_v16 = vld [vmem:[%s2511_s1 + $0x28] sm:$0xff] }
 0x1f0   : > { %v670_v55 = vsub.f32 1.5, %v669_v14  ;;  %v731_v58 = vpack.c.bf16 %v721_v27, %v720_v43  ;;  %v690_v3 = vadd.f32 1e-06, %v641_v26  ;;  %v2357_v14 = vld [vmem:[%s2511_s1 + $0x20] sm:$0xff]  ;;  %v1506_v23 = vld [vmem:[%s2513_s3 + $0xac] sm:$0xf] }
 0x1f1   : > { %v658_v53 = vsub.f32 1.5, %v657_v24  ;;  %1606 = vrcp.f32 %v691_v30  ;;  %v1434_v22 = vld [vmem:[%s2513_s3 + $0xb4] sm:$0xf0]  ;;  %v1503_v24 = vld [vmem:[%s2513_s3 + $0x94] sm:$0xf] }
 0x1f2   : > { %v671_v28 = vmul.f32 %v1599_v63, %v670_v55  ;;  %1608 = vrcp.f32 %v690_v3  ;;  %v1437_v27 = vor.u32 %v1506_v23, %v1434_v22  ;;  %v1430_v52 = vld [vmem:[%s2513_s3 + $0x9c] sm:$0xf0]  ;;  %v1500_v43 = vld [vmem:[%s2513_s3 + $0x7c] sm:$0xf]  ;;  %v1426_v26 = vld [vmem:[%s2513_s3 + $0x84] sm:$0xf0] }
 0x1f3   : > { %v659_v31 = vmul.f32 %v1601_v11, %v658_v53  ;;  %v1433_v55 = vor.u32 %v1503_v24, %v1430_v52  ;;  %v1429_v30 = vor.u32 %v1500_v43, %v1426_v26  ;;  %v1497_v53 = vld [vmem:[%s2513_s3 + $0x64] sm:$0xf] }
 0x1f4   : > { %861 = vmatmul.bf16.gmra.mxu2 %v730_v8  ;;  %v672_v20 = vmul.f32 %v671_v28, %v2284_v36  ;;  %1044 = vmatpush.bf16.msrb.mxu0 %v1437_v27  ;;  %v2393_v28 = vld [vmem:[%s2511_s1 + $0x30] sm:$0xff] }
 0x1f5   : > { %v660_v7 = vmul.f32 %v659_v31, %v2287_v37  ;;  %v1494_v31 = vld [vmem:[%s2513_s3 + $0x4c] sm:$0xf] }
 0x1f6   : > { %v674_v34 = vsel %vm673_vm8, %v2284_v36, %v672_v20  ;;  %v1418_v20 = vld [vmem:[%s2513_s3 + $0x54] sm:$0xf0] }
 0x1f7   : > { %v1607_v1 = vpop.eup %1606  ;;  %v662_v54 = vsel %vm661_vm3, %v2287_v37, %v660_v7  ;;  %v677_v29 = vsel %vm675_vm4, %v676_v42, %v674_v34  ;;  %v1491_v7 = vld [vmem:[%s2513_s3 + $0x34] sm:$0xf]  ;;  %v1421_v42 = vor.u32 %v1494_v31, %v1418_v20 }
 0x1f8   : > { %v1609_v33 = vpop.eup %1608  ;;  %v723_v50 = vmul.f32 %v1607_v1, %v2031_v6  ;;  %v665_v51 = vsel %vm663_vm5, %v664_v35, %v662_v54  ;;  %v693_v39 = vadd.f32 1e-06, %v677_v29  ;;  %1045 = vmatpush.bf16.msrb.mxu0 %v1433_v55  ;;  %v1414_v1 = vld [vmem:[%s2513_s3 + $0x3c] sm:$0xf0]  ;;  %v2411_v35 = vld [vmem:[%s2511_s1 + $0x38] sm:$0xff] }
 0x1f9   : > { %v722_v38 = vmul.f32 %v1609_v33, %v2038_v2  ;;  %v692_v41 = vadd.f32 1e-06, %v665_v51  ;;  %v1417_v34 = vor.u32 %v1491_v7, %v1414_v1  ;;  %v1488_v33 = vld [vmem:[%s2513_s3 + $0x1c] sm:$0xf]  ;;  %v1410_v54 = vld [vmem:[%s2513_s3 + $0x24] sm:$0xf0] }
 0x1fa   : > { %1610 = vrcp.f32 %v693_v39  ;;  %v1485_v29 = vld [vmem:[%s2513_s3 + $0x4] sm:$0xf] }
 0x1fb   : > { %v732_v40 = vpack.c.bf16 %v723_v50, %v722_v38  ;;  %1612 = vrcp.f32 %v692_v41  ;;  %v1413_v50 = vor.u32 %v1488_v33, %v1410_v54  ;;  %v1406_v38 = vld [vmem:[%s2513_s3 + $0xc] sm:$0xf0]  ;;  %v2429_v39 = vld [vmem:[%s2514_s4] sm:$0xff] }
 0x1fc   : > { %1046 = vmatpush.bf16.msrb.mxu0 %v1429_v30  ;;  %v1409_v51 = vor.u32 %v1485_v29, %v1406_v38  ;;  %v890_v41 = vperm.slane %v2429_v39, 0 }
 0x200   : > { %v1611_v36 = vpop.eup %1610 }
 0x201   : > { %v1613_v44 = vpop.eup %1612  ;;  %v725_v49 = vmul.f32 %v1611_v36, %v2026_v45 }
 0x202   : > { %v724_v59 = vmul.f32 %v1613_v44, %v2024_v47 }
 0x204   : > { %866 = vmatmul.bf16.gmra.mxu2 %v731_v58  ;;  %v733_v60 = vpack.c.bf16 %v725_v49, %v724_v59  ;;  %v1422_v58 = vld [vmem:[%s2513_s3 + $0x6c] sm:$0xf0] }
 0x205   : > { %v1425_v3 = vor.u32 %v1497_v53, %v1422_v58 }
 0x207   : > { %1047 = vmatpush.bf16.msrb.mxu0 %v1425_v3 }
 0x20b   : > { %1048 = vmatpush.bf16.msrb.mxu0 %v1421_v42 }
 0x20f   : > { %1049 = vmatpush.bf16.msrb.mxu0 %v1417_v34 }
 0x213   : > { %1050 = vmatpush.bf16.msrb.mxu0 %v1413_v50 }
 0x214   : > { %871 = vmatmul.bf16.gmra.mxu2 %v732_v40 }
 0x217   : > { %1051 = vmatpush.bf16.msrb.mxu0 %v1409_v51 }
 0x224   : > { %876 = vmatmul.bf16.gmra.mxu2 %v733_v60 }
 0x237   : > { %v842_v37 = vpop.f32.mrf.mxu2 }
 0x23f   : > { %v844_v6 = vpop.f32.mrf.mxu2 }
 0x240   : > { %v882_v32 = vpack.c.bf16 %v844_v6, %v842_v37 }
 0x247   : > { %v847_v18 = vpop.f32.mrf.mxu2 }
 0x24f   : > { %v849_v2 = vpop.f32.mrf.mxu2 }
 0x250   : > { %v883_v21 = vpack.c.bf16 %v849_v2, %v847_v18 }
 0x257   : > { %v852_v62 = vpop.f32.mrf.mxu2 }
 0x25f   : > { %v854_v63 = vpop.f32.mrf.mxu2 }
 0x260   : > { %v884_v0 = vpack.c.bf16 %v854_v63, %v852_v62 }
 0x267   : > { %v857_v9 = vpop.f32.mrf.mxu2 }
 0x26f   : > { %v859_v13 = vpop.f32.mrf.mxu2 }
 0x270   : > { %v885_v5 = vpack.c.bf16 %v859_v13, %v857_v9 }
 0x277   : > { %v862_v11 = vpop.f32.mrf.mxu2 }
 0x27f   : > { %v864_v8 = vpop.f32.mrf.mxu2 }
 0x280   : > { %v886_v46 = vpack.c.bf16 %v864_v8, %v862_v11 }
 0x287   : > { %v867_v57 = vpop.f32.mrf.mxu2 }
 0x28f   : > { %v869_v45 = vpop.f32.mrf.mxu2 }
 0x290   : > { %v887_v61 = vpack.c.bf16 %v869_v45, %v867_v57 }
 0x297   : > { %v872_v4 = vpop.f32.mrf.mxu2 }
 0x29f   : > { %v874_v47 = vpop.f32.mrf.mxu2 }
 0x2a0   : > { %v888_v10 = vpack.c.bf16 %v874_v47, %v872_v4 }
 0x2a7   : > { %v877_v25 = vpop.f32.mrf.mxu2 }
 0x2af   : > { %v879_v56 = vpop.f32.mrf.mxu2 }
 0x2b0   : > { %v889_v12 = vpack.c.bf16 %v879_v56, %v877_v25 }
 0x2b2   : > { %939 = vmatpush.bf16.msrb.mxu3 %v889_v12 }
 0x2b6   : > { %940 = vmatpush.bf16.msrb.mxu3 %v888_v10 }
 0x2ba   : > { %941 = vmatpush.bf16.msrb.mxu3 %v887_v61 }
 0x2be   : > { %942 = vmatpush.bf16.msrb.mxu3 %v886_v46 }
 0x2c2   : > { %943 = vmatpush.bf16.msrb.mxu3 %v885_v5 }
 0x2c6   : > { %944 = vmatpush.bf16.msrb.mxu3 %v884_v0 }
 0x2ca   : > { %945 = vmatpush.bf16.msrb.mxu3 %v883_v21 }
 0x2ce   : > { %946 = vmatpush.bf16.msrb.mxu3 %v882_v32 }
 0x2d1   : > { %947 = vmatmul.bf16.vlgmr.msrb.gmra.mxu3 %v2333_v17 }
 0x2e1   : > { %952 = vmatmul.bf16.gmra.mxu3 %v2339_v15 }
 0x2f1   : > { %957 = vmatmul.bf16.gmra.mxu3 %v2345_v48 }
 0x301   : > { %962 = vmatmul.bf16.gmra.mxu3 %v2351_v19 }
 0x311   : > { %967 = vmatmul.bf16.gmra.mxu3 %v2357_v14 }
 0x321   : > { %972 = vmatmul.bf16.gmra.mxu3 %v2363_v16 }
 0x331   : > { %977 = vmatmul.bf16.gmra.mxu3 %v2393_v28 }
 0x341   : > { %982 = vmatmul.bf16.gmra.mxu3 %v2411_v35 }
 0x354   : > { %v948_v40 = vpop.f32.mrf.mxu3 }
 0x355   : > { %v949_v36 = vadd.f32 %v948_v40, %v890_v41 }
 0x357   : > { %v988_v59 = vmax.f32 %v949_v36, 0.0 }
 0x35c   : > { %v950_v44 = vpop.f32.mrf.mxu3 }
 0x35d   : > { %v951_v49 = vadd.f32 %v950_v44, %v890_v41 }
 0x35f   : > { %v989_v60 = vmax.f32 %v951_v49, 0.0 }
 0x361   : > { %v1004_v37 = vpack.c.bf16 %v989_v60, %v988_v59 }
 0x363   : > { %1052 = vmatmul.bf16.vlgmr.msrb.gmra.mxu0 %v1004_v37 }
 0x364   : > { %v953_v6 = vpop.f32.mrf.mxu3 }
 0x365   : > { %v954_v32 = vadd.f32 %v953_v6, %v890_v41 }
 0x367   : > { %v990_v21 = vmax.f32 %v954_v32, 0.0 }
 0x36c   : > { %v955_v18 = vpop.f32.mrf.mxu3 }
 0x36d   : > { %v956_v2 = vadd.f32 %v955_v18, %v890_v41 }
 0x36f   : > { %v991_v62 = vmax.f32 %v956_v2, 0.0 }
 0x371   : > { %v1005_v63 = vpack.c.bf16 %v991_v62, %v990_v21 }
 0x373   : > { %1057 = vmatmul.bf16.gmra.mxu0 %v1005_v63 }
 0x374   : > { %v958_v0 = vpop.f32.mrf.mxu3 }
 0x375   : > { %v959_v9 = vadd.f32 %v958_v0, %v890_v41 }
 0x377   : > { %v992_v11 = vmax.f32 %v959_v9, 0.0 }
 0x37c   : > { %v960_v13 = vpop.f32.mrf.mxu3 }
 0x37d   : > { %v961_v5 = vadd.f32 %v960_v13, %v890_v41 }
 0x37f   : > { %v993_v8 = vmax.f32 %v961_v5, 0.0 }
 0x381   : > { %v1006_v57 = vpack.c.bf16 %v993_v8, %v992_v11 }
 0x383   : > { %1062 = vmatmul.bf16.gmra.mxu0 %v1006_v57 }
 0x384   : > { %v963_v45 = vpop.f32.mrf.mxu3 }
 0x385   : > { %v964_v4 = vadd.f32 %v963_v45, %v890_v41 }
 0x387   : > { %v994_v56 = vmax.f32 %v964_v4, 0.0 }
 0x38c   : > { %v965_v47 = vpop.f32.mrf.mxu3 }
 0x38d   : > { %v966_v25 = vadd.f32 %v965_v47, %v890_v41 }
 0x38f   : > { %v995_v12 = vmax.f32 %v966_v25, 0.0 }
 0x391   : > { %v1007_v10 = vpack.c.bf16 %v995_v12, %v994_v56  ;;  %v1101_v12 = vperm.slane %v2429_v39, 1 }
 0x393   : > { %1067 = vmatmul.bf16.gmra.mxu0 %v1007_v10 }
 0x394   : > { %v968_v61 = vpop.f32.mrf.mxu3 }
 0x395   : > { %v969_v46 = vadd.f32 %v968_v61, %v890_v41 }
 0x397   : > { %v996_v24 = vmax.f32 %v969_v46, 0.0 }
 0x39c   : > { %v970_v23 = vpop.f32.mrf.mxu3 }
 0x39d   : > { %v971_v22 = vadd.f32 %v970_v23, %v890_v41 }
 0x39f   : > { %v997_v27 = vmax.f32 %v971_v22, 0.0 }
 0x3a1   : > { %v1008_v52 = vpack.c.bf16 %v997_v27, %v996_v24 }
 0x3a3   : > { %1072 = vmatmul.bf16.gmra.mxu0 %v1008_v52 }
 0x3a4   : > { %v973_v55 = vpop.f32.mrf.mxu3 }
 0x3a5   : > { %v974_v43 = vadd.f32 %v973_v55, %v890_v41 }
 0x3a7   : > { %v998_v53 = vmax.f32 %v974_v43, 0.0 }
 0x3ac   : > { %v975_v26 = vpop.f32.mrf.mxu3 }
 0x3ad   : > { %v976_v30 = vadd.f32 %v975_v26, %v890_v41 }
 0x3af   : > { %v999_v58 = vmax.f32 %v976_v30, 0.0 }
 0x3b1   : > { %v1009_v3 = vpack.c.bf16 %v999_v58, %v998_v53 }
 0x3b3   : > { %1077 = vmatmul.bf16.gmra.mxu0 %v1009_v3 }
 0x3b4   : > { %v978_v31 = vpop.f32.mrf.mxu3 }
 0x3b5   : > { %v979_v20 = vadd.f32 %v978_v31, %v890_v41 }
 0x3b7   : > { %v1000_v1 = vmax.f32 %v979_v20, 0.0 }
 0x3bc   : > { %v980_v7 = vpop.f32.mrf.mxu3 }
 0x3bd   : > { %v981_v42 = vadd.f32 %v980_v7, %v890_v41 }
 0x3bf   : > { %v1001_v34 = vmax.f32 %v981_v42, 0.0 }
 0x3c1   : > { %v1010_v33 = vpack.c.bf16 %v1001_v34, %v1000_v1 }
 0x3c3   : > { %1082 = vmatmul.bf16.gmra.mxu0 %v1010_v33 }
 0x3c4   : > { %v983_v54 = vpop.f32.mrf.mxu3 }
 0x3c5   : > { %v984_v50 = vadd.f32 %v983_v54, %v890_v41 }
 0x3c7   : > { %v1002_v51 = vmax.f32 %v984_v50, 0.0 }
 0x3cc   : > { %v985_v29 = vpop.f32.mrf.mxu3 }
 0x3cd   : > { %v986_v38 = vadd.f32 %v985_v29, %v890_v41 }
 0x3cf   : > { %v1003_v40 = vmax.f32 %v986_v38, 0.0 }
 0x3d1   : > { %v1011_v36 = vpack.c.bf16 %v1003_v40, %v1002_v51 }
 0x3d3   : > { %1087 = vmatmul.bf16.gmra.mxu0 %v1011_v36 }
 0x3e0   : > { %v1053_v44 = vpop.f32.mrf.mxu0 }
 0x3e8   : > { %v1055_v49 = vpop.f32.mrf.mxu0 }
 0x3e9   : > { %v1093_v59 = vpack.c.bf16 %v1055_v49, %v1053_v44 }
 0x3f0   : > { %v1058_v60 = vpop.f32.mrf.mxu0 }
 0x3f8   : > { %v1060_v37 = vpop.f32.mrf.mxu0 }
 0x3f9   : > { %v1094_v6 = vpack.c.bf16 %v1060_v37, %v1058_v60 }
 0x400   : > { %v1063_v32 = vpop.f32.mrf.mxu0 }
 0x408   : > { %v1065_v18 = vpop.f32.mrf.mxu0 }
 0x409   : > { %v1095_v2 = vpack.c.bf16 %v1065_v18, %v1063_v32  ;;  %v1472_v18 = vld [vmem:[%s2513_s3 + $0xb0] sm:$0xf] }
 0x410   : > { %v1068_v21 = vpop.f32.mrf.mxu0 }
 0x418   : > { %v1070_v62 = vpop.f32.mrf.mxu0 }
 0x419   : > { %v1096_v63 = vpack.c.bf16 %v1070_v62, %v1068_v21  ;;  %v1468_v21 = vld [vmem:[%s2513_s3 + $0x98] sm:$0xf] }
 0x420   : > { %v1073_v0 = vpop.f32.mrf.mxu0 }
 0x428   : > { %v1075_v9 = vpop.f32.mrf.mxu0 }
 0x429   : > { %v1097_v25 = vpack.c.bf16 %v1075_v9, %v1073_v0  ;;  %v1505_v9 = vld [vmem:[%s2513_s3 + $0xa0] sm:$0xf0] }
 0x430   : > { %v1078_v13 = vpop.f32.mrf.mxu0 }
 0x438   : > { %v1080_v41 = vpop.f32.mrf.mxu0 }
 0x439   : > { %v1098_v47 = vpack.c.bf16 %v1080_v41, %v1078_v13 }
 0x440   : > { %v1083_v5 = vpop.f32.mrf.mxu0 }
 0x448   : > { %v1085_v11 = vpop.f32.mrf.mxu0 }
 0x449   : > { %v1099_v4 = vpack.c.bf16 %v1085_v11, %v1083_v5  ;;  %v1469_v11 = vor.u32 %v1505_v9, %v1468_v21 }
 0x450   : > { %v1088_v8 = vpop.f32.mrf.mxu0 }
 0x458   : > { %v1090_v57 = vpop.f32.mrf.mxu0 }
 0x459   : > { %v1100_v45 = vpack.c.bf16 %v1090_v57, %v1088_v8  ;;  %v1464_v8 = vld [vmem:[%s2513_s3 + $0x80] sm:$0xf]  ;;  %v1502_v57 = vld [vmem:[%s2513_s3 + $0x88] sm:$0xf0] }
 0x45b   : > { %1102 = vmatpush.bf16.msrb.mxu1 %v1100_v45 }
 0x45f   : > { %1103 = vmatpush.bf16.msrb.mxu1 %v1099_v4 }
 0x463   : > { %1104 = vmatpush.bf16.msrb.mxu1 %v1098_v47 }
 0x467   : > { %1105 = vmatpush.bf16.msrb.mxu1 %v1097_v25 }
 0x46b   : > { %1106 = vmatpush.bf16.msrb.mxu1 %v1096_v63 }
 0x46f   : > { %1107 = vmatpush.bf16.msrb.mxu1 %v1095_v2  ;;  %v1508_v2 = vld [vmem:[%s2513_s3 + $0xb8] sm:$0xf0] }
 0x470   : > { %v1473_v0 = vor.u32 %v1508_v2, %v1472_v18 }
 0x472   : > { %1245 = vmatpush.bf16.msra.mxu3 %v1473_v0 }
 0x473   : > { %1108 = vmatpush.bf16.msrb.mxu1 %v1094_v6 }
 0x476   : > { %1246 = vmatpush.bf16.msra.mxu3 %v1469_v11 }
 0x477   : > { %1109 = vmatpush.bf16.msrb.mxu1 %v1093_v59 }
 0x47a   : > { %1110 = vmatmul.bf16.vlgmr.msrb.gmra.mxu1 %v2333_v17 }
 0x48a   : > { %1115 = vmatmul.bf16.gmra.mxu1 %v2339_v15 }
 0x49a   : > { %1120 = vmatmul.bf16.gmra.mxu1 %v2345_v48 }
 0x4aa   : > { %1125 = vmatmul.bf16.gmra.mxu1 %v2351_v19 }
 0x4ba   : > { %1130 = vmatmul.bf16.gmra.mxu1 %v2357_v14 }
 0x4ca   : > { %1135 = vmatmul.bf16.gmra.mxu1 %v2363_v16 }
 0x4da   : > { %1140 = vmatmul.bf16.gmra.mxu1 %v2393_v28 }
 0x4ea   : > { %1145 = vmatmul.bf16.gmra.mxu1 %v2411_v35 }
 0x4f7   : > { %v1111_v56 = vpop.f32.mrf.mxu1 }
 0x4f8   : > { %v1112_v10 = vadd.f32 %v1111_v56, %v1101_v12  ;;  %v1465_v56 = vor.u32 %v1502_v57, %v1464_v8 }
 0x4fa   : > { %v1151_v46 = vmax.f32 %v1112_v10, 0.0  ;;  %v1460_v10 = vld [vmem:[%s2513_s3 + $0x68] sm:$0xf]  ;;  %1247 = vmatpush.bf16.msra.mxu3 %v1465_v56 }
 0x4ff   : > { %v1113_v61 = vpop.f32.mrf.mxu1 }
 0x500   : > { %v1114_v17 = vadd.f32 %v1113_v61, %v1101_v12  ;;  %v1499_v61 = vld [vmem:[%s2513_s3 + $0x70] sm:$0xf0] }
 0x502   : > { %v1152_v15 = vmax.f32 %v1114_v17, 0.0 }
 0x504   : > { %v2441_v23 = vpack.c.bf16 %v1152_v15, %v1151_v46  ;;  %v1461_v15 = vor.u32 %v1499_v61, %v1460_v10 }
 0x506   : > { %1248 = vmatpush.bf16.msra.mxu3 %v1461_v15 }
 0x507   : > { %v1116_v48 = vpop.f32.mrf.mxu1 }
 0x508   : > { %v1117_v19 = vadd.f32 %v1116_v48, %v1101_v12  ;;  %v1496_v48 = vld [vmem:[%s2513_s3 + $0x58] sm:$0xf0] }
 0x50a   : > { %v1153_v24 = vmax.f32 %v1117_v19, 0.0 }
 0x50f   : > { %v1118_v22 = vpop.f32.mrf.mxu1 }
 0x510   : > { %v1119_v14 = vadd.f32 %v1118_v22, %v1101_v12  ;;  %v1452_v22 = vld [vmem:[%s2513_s3 + $0x38] sm:$0xf] }
 0x512   : > { %v1154_v16 = vmax.f32 %v1119_v14, 0.0  ;;  %v1493_v14 = vld [vmem:[%s2513_s3 + $0x40] sm:$0xf0] }
 0x514   : > { %v2443_v27 = vpack.c.bf16 %v1154_v16, %v1153_v24  ;;  %v1453_v24 = vor.u32 %v1493_v14, %v1452_v22  ;;  %v1448_v16 = vld [vmem:[%s2513_s3 + $0x20] sm:$0xf] }
 0x517   : > { %v1121_v28 = vpop.f32.mrf.mxu1 }
 0x518   : > { %v1122_v35 = vadd.f32 %v1121_v28, %v1101_v12  ;;  %v1490_v28 = vld [vmem:[%s2513_s3 + $0x28] sm:$0xf0] }
 0x51a   : > { %v1155_v43 = vmax.f32 %v1122_v35, 0.0  ;;  %v1449_v35 = vor.u32 %v1490_v28, %v1448_v16 }
 0x51f   : > { %v1123_v52 = vpop.f32.mrf.mxu1 }
 0x520   : > { %v1124_v55 = vadd.f32 %v1123_v52, %v1101_v12  ;;  %v1484_v52 = vld [vmem:[%s2511_s1 + $0x40] sm:$0xff] }
 0x522   : > { %v1156_v26 = vmax.f32 %v1124_v55, 0.0  ;;  %v1444_v55 = vld [vmem:[%s2513_s3 + $0x8] sm:$0xf] }
 0x524   : > { %v2445_v30 = vpack.c.bf16 %v1156_v26, %v1155_v43  ;;  %v1487_v43 = vld [vmem:[%s2513_s3 + $0x10] sm:$0xf0] }
 0x525   : > { %v1445_v26 = vor.u32 %v1487_v43, %v1444_v55 }
 0x527   : > { %v1126_v53 = vpop.f32.mrf.mxu1 }
 0x528   : > { %v1127_v58 = vadd.f32 %v1126_v53, %v1101_v12 }
 0x52a   : > { %v1157_v20 = vmax.f32 %v1127_v58, 0.0 }
 0x52f   : > { %v1128_v3 = vpop.f32.mrf.mxu1 }
 0x530   : > { %v1129_v31 = vadd.f32 %v1128_v3, %v1101_v12 }
 0x532   : > { %v1158_v7 = vmax.f32 %v1129_v31, 0.0 }
 0x534   : > { %v1170_v42 = vpack.c.bf16 %v1158_v7, %v1157_v20 }
 0x537   : > { %v1131_v1 = vpop.f32.mrf.mxu1 }
 0x538   : > { %v1132_v45 = vadd.f32 %v1131_v1, %v1101_v12 }
 0x53a   : > { %v1159_v17 = vmax.f32 %v1132_v45, 0.0 }
 0x53f   : > { %v1133_v34 = vpop.f32.mrf.mxu1 }
 0x540   : > { %v1134_v13 = vadd.f32 %v1133_v34, %v1101_v12 }
 0x542   : > { %v1160_v47 = vmax.f32 %v1134_v13, 0.0 }
 0x544   : > { %v1171_v46 = vpack.c.bf16 %v1160_v47, %v1159_v17 }
 0x547   : > { %v1136_v33 = vpop.f32.mrf.mxu1 }
 0x548   : > { %v1137_v62 = vadd.f32 %v1136_v33, %v1101_v12 }
 0x54a   : > { %v1161_v4 = vmax.f32 %v1137_v62, 0.0 }
 0x54f   : > { %v1138_v54 = vpop.f32.mrf.mxu1 }
 0x550   : > { %v1139_v37 = vadd.f32 %v1138_v54, %v1101_v12 }
 0x552   : > { %v1162_v41 = vmax.f32 %v1139_v37, 0.0 }
 0x554   : > { %v1172_v25 = vpack.c.bf16 %v1162_v41, %v1161_v4 }
 0x557   : > { %v1141_v50 = vpop.f32.mrf.mxu1 }
 0x558   : > { %v1142_v49 = vadd.f32 %v1141_v50, %v1101_v12 }
 0x55a   : > { %v1163_v63 = vmax.f32 %v1142_v49, 0.0 }
 0x55f   : > { %v1143_v29 = vpop.f32.mrf.mxu1 }
 0x560   : > { %v1144_v36 = vadd.f32 %v1143_v29, %v1101_v12 }
 0x562   : > { %v1164_v6 = vmax.f32 %v1144_v36, 0.0 }
 0x564   : > { %v1173_v5 = vpack.c.bf16 %v1164_v6, %v1163_v63 }
 0x567   : > { %v1146_v38 = vpop.f32.mrf.mxu1 }
 0x568   : > { %v1147_v51 = vadd.f32 %v1146_v38, %v1101_v12 }
 0x56a   : > { %v1165_v59 = vmax.f32 %v1147_v51, 0.0 }
 0x56f   : > { %v1148_v40 = vpop.f32.mrf.mxu1 }
 0x570   : > { %v1149_v44 = vadd.f32 %v1148_v40, %v1101_v12  ;;  %v1456_v12 = vld [vmem:[%s2513_s3 + $0x50] sm:$0xf] }
 0x571   : > { %v1457_v19 = vor.u32 %v1496_v48, %v1456_v12 }
 0x572   : > { %v1166_v60 = vmax.f32 %v1149_v44, 0.0 }
 0x573   : > { %1249 = vmatpush.bf16.msra.mxu3 %v1457_v19 }
 0x574   : > { %v1174_v32 = vpack.c.bf16 %v1166_v60, %v1165_v59 }
 0x576   : > { %1181 = vmatpush.bf16.msra.mxu2 %v1174_v32 }
 0x577   : > { %1250 = vmatpush.bf16.msra.mxu3 %v1453_v24 }
 0x57a   : > { %1182 = vmatpush.bf16.msra.mxu2 %v1173_v5 }
 0x57b   : > { %1251 = vmatpush.bf16.msra.mxu3 %v1449_v35 }
 0x57e   : > { %1183 = vmatpush.bf16.msra.mxu2 %v1172_v25 }
 0x57f   : > { %1252 = vmatpush.bf16.msra.mxu3 %v1445_v26 }
 0x582   : > { %1184 = vmatpush.bf16.msra.mxu2 %v1171_v46 }
 0x586   : > { %1185 = vmatpush.bf16.msra.mxu2 %v1170_v42 }
 0x58a   : > { %1186 = vmatpush.bf16.msra.mxu2 %v2445_v30 }
 0x58e   : > { %1187 = vmatpush.bf16.msra.mxu2 %v2443_v27 }
 0x592   : > { %1188 = vmatpush.bf16.msra.mxu2 %v2441_v23  ;;  %v1196_v23 = vperm.slane %v2429_v39, 2 }
 0x595   : > { %1189 = vmatmul.bf16.vlgmr.msra.gmra.mxu2 %v1484_v52 }
 0x618   : > { %v1190_v30 = vpop.f32.mrf.mxu2 }
 0x620   : > { %v1192_v27 = vpop.f32.mrf.mxu2 }
 0x621   : > { %v1195_v53 = vpack.c.bf16 %v1192_v27, %v1190_v30 }
 0x623   : > { %1253 = vmatmul.bf16.vlgmr.msra.gmra.mxu3 %v1195_v53 }
 0x6a6   : > { %v1254_v58 = vpop.f32.mrf.mxu3 }
 0x6a7   : > { %v1255_v3 = vadd.f32 %v1254_v58, %v1196_v23 }
 0x6a9   : > { %1259 = vst [vmem:[%s226_s14] sm:$0xff] %v1255_v3 }
 0x6ae   : > { %v1256_v31 = vpop.f32.mrf.mxu3 }
 0x6af   : > { %v1257_v20 = vadd.f32 %v1256_v31, %v1196_v23 }
 0x6b1   : > { %1260 = vst [vmem:[%s226_s14 + $0x8] sm:$0xff] %v1257_v20 }
 0x6b2 PF: > { %s15_s18 = sadd.s32 1, %s1620_s18  }
 0x6b3   : > { %p12_p5 = scmp.ge.s32.totalorder %s15_s18, 4  }
 0x6b5   :  { %14 = sbr.rel (!%p12_p5) target bundleno = 1 (0x1), region = 70 }

</bundles_post_ra>
